<compile_context>
chip_gen: v7x
topology: tpu7x:2x2x1
jax: 0.10.0
libtpu: 0.0.40
codegen_flags: <defaults>
</compile_context>

<pallas_src>
import numpy as np
import jax
import jax.numpy as jnp
from jax.experimental import pallas as pl
from jax.experimental.pallas import tpu as pltpu


# ----------------------------------------------------------------------------
# Fused Pallas kernel (one image per grid step)
# ----------------------------------------------------------------------------
def _sigmoid(v):
    return 1.0 / (1.0 + jnp.exp(-v))


def _conv_apply(inp, m_ref, b_ref, kh, h_out):
    """VALID conv via Kh Toeplitz matmuls: out = sum_i inp[i:i+Ho,:] @ M_i + b."""
    acc = jnp.dot(inp[0:h_out, :], m_ref[0], preferred_element_type=jnp.float32)
    for i in range(1, kh):
        acc = acc + jnp.dot(inp[i:i + h_out, :], m_ref[i],
                            preferred_element_type=jnp.float32)
    return acc + b_ref[...]


def _pool_apply(inp, s_ref, t_ref):
    """2x2 max-pool (stride 2) via 0/1 row/lane selection matmuls + maximum."""
    r = jnp.maximum(jnp.dot(s_ref[0], inp, preferred_element_type=jnp.float32),
                    jnp.dot(s_ref[1], inp, preferred_element_type=jnp.float32))
    return jnp.maximum(jnp.dot(r, t_ref[0], preferred_element_type=jnp.float32),
                       jnp.dot(r, t_ref[1], preferred_element_type=jnp.float32))


def _lenet_kernel(x_ref,
                  m1_ref, b1_ref, s1_ref, t1_ref,
                  m2_ref, b2_ref, s2_ref, t2_ref,
                  m3_ref, b3_ref,
                  w4_ref, b4_ref, w5_ref, b5_ref,
                  o_ref):
    x = x_ref[0]                                              # (28, 28)
    y1 = _sigmoid(_conv_apply(x, m1_ref, b1_ref, 5, 24))      # (24, 6*24=144)
    p1 = _sigmoid(_pool_apply(y1, s1_ref, t1_ref))            # (12, 6*12=72)
    y2 = _conv_apply(p1, m2_ref, b2_ref, 5, 8)                # (8, 16*8=128)
    p2 = _pool_apply(y2, s2_ref, t2_ref)                      # (4, 16*4=64)
    y3 = _conv_apply(p2, m3_ref, b3_ref, 4, 1)                # (1, 120)
    h = _sigmoid(jnp.dot(y3, w4_ref[...],
                         preferred_element_type=jnp.float32) + b4_ref[...])
    o_ref[0] = (jnp.dot(h, w5_ref[...],
                        preferred_element_type=jnp.float32) + b5_ref[...])


def _resident_spec(arr):
    """Whole-array block, constant index map -> stays resident in VMEM."""
    zeros = (0,) * arr.ndim
    return pl.BlockSpec(arr.shape, lambda b, _z=zeros: _z)


@jax.jit
def lenet_forward(x_nchw, kp):
    N, C, H, W = x_nchw.shape
    # (N,C,H,W) -> (N, H, C*W): channel-major / width-minor lane layout.
    x2 = jnp.transpose(x_nchw, (0, 2, 1, 3)).reshape(N, H, C * W).astype(jnp.float32)
    nc = kp["w5"].shape[1]

    weights = [kp["m1"], kp["b1"], kp["s1"], kp["t1"],
               kp["m2"], kp["b2"], kp["s2"], kp["t2"],
               kp["m3"], kp["b3"], kp["w4"], kp["b4"], kp["w5"], kp["b5"]]

    in_specs = [pl.BlockSpec((1, H, C * W), lambda b: (b, 0, 0))]
    in_specs += [_resident_spec(w) for w in weights]

    flops_per_img = 2 * (5 * 24 * 28 * 144 + 2 * 12 * 24 * 144 + 2 * 12 * 144 * 72
                         + 5 * 8 * 72 * 128 + 2 * 4 * 8 * 128 + 2 * 4 * 128 * 64
                         + 4 * 1 * 64 * 120 + 120 * 64 + 64 * nc)
    transc_per_img = 24 * 144 + 12 * 72 + 64
    bytes_acc = int(x2.size) * 4 + sum(int(w.size) * 4 for w in weights) + N * nc * 4

    out = pl.pallas_call(
        _lenet_kernel,
        out_shape=jax.ShapeDtypeStruct((N, 1, nc), jnp.float32),
        grid=(N,),
        in_specs=in_specs,
        out_specs=pl.BlockSpec((1, 1, nc), lambda b: (b, 0, 0)),
        compiler_params=pltpu.CompilerParams(
            dimension_semantics=("parallel",),
            vmem_limit_bytes=32 * 1024 * 1024,
        ),
        cost_estimate=pl.CostEstimate(
            flops=N * flops_per_img,
            transcendentals=N * transc_per_img,
            bytes_accessed=bytes_acc,
        ),
    )(x2, *weights)
    return out.reshape(N, nc)


# ----------------------------------------------------------------------------
# Host-side (init-time) weight preprocessing
# ----------------------------------------------------------------------------
def _toeplitz_stack(w_oihw, w_in):
    """(Cout,Cin,Kh,Kw) -> (Kh, Cin*Win, Cout*Wout) Toeplitz slabs.

    Activation lane layout: lane = channel * width + x.
    out2d[h, o*Wo + x] = sum_i in2d[h+i, :] @ M_i[:, o*Wo + x]."""
    w = np.asarray(w_oihw, np.float32)
    c_out, c_in, kh, kw = w.shape
    w_out = w_in - kw + 1
    m = np.zeros((kh, c_in * w_in, c_out * w_out), np.float32)
    for i in range(kh):
        for c in range(c_in):
            for o in range(c_out):
                for x in range(w_out):
                    m[i, c * w_in + x: c * w_in + x + kw, o * w_out + x] = w[o, c, i, :]
    return jnp.asarray(m)


def _row_pool_select(h_in):
    h_out = h_in // 2
    s = np.zeros((2, h_out, h_in), np.float32)
    idx = np.arange(h_out)
    s[0, idx, 2 * idx] = 1.0
    s[1, idx, 2 * idx + 1] = 1.0
    return jnp.asarray(s)


def _lane_pool_select(c, w_in):
    w_out = w_in // 2
    t = np.zeros((2, c * w_in, c * w_out), np.float32)
    idx = np.arange(w_out)
    for ch in range(c):
        t[0, ch * w_in + 2 * idx, ch * w_out + idx] = 1.0
        t[1, ch * w_in + 2 * idx + 1, ch * w_out + idx] = 1.0
    return jnp.asarray(t)


def _conv_bias_row(b, w_out):
    return jnp.asarray(np.repeat(np.asarray(b, np.float32), w_out)[None, :])


def init_params(key, num_classes=10):
    ks = jax.random.split(key, 10)
    n = lambda k, shape, s: jax.random.normal(k, shape, jnp.float32) * s
    raw = {
        "w1": n(ks[0], (6, 1, 5, 5), 0.20),      "b1": n(ks[1], (6,), 0.10),
        "w2": n(ks[2], (16, 6, 5, 5), 0.10),     "b2": n(ks[3], (16,), 0.10),
        "w3": n(ks[4], (120, 16, 4, 4), 0.08),   "b3": n(ks[5], (120,), 0.05),
        "w4": n(ks[6], (64, 120), 0.10),         "b4": n(ks[7], (64,), 0.05),
        "w5": n(ks[8], (num_classes, 64), 0.10), "b5": n(ks[9], (num_classes,), 0.05),
    }
    kp = {
        "m1": _toeplitz_stack(raw["w1"], 28), "b1": _conv_bias_row(raw["b1"], 24),
        "s1": _row_pool_select(24),           "t1": _lane_pool_select(6, 24),
        "m2": _toeplitz_stack(raw["w2"], 12), "b2": _conv_bias_row(raw["b2"], 8),
        "s2": _row_pool_select(8),            "t2": _lane_pool_select(16, 8),
        "m3": _toeplitz_stack(raw["w3"], 4),  "b3": _conv_bias_row(raw["b3"], 1),
        "w4": jnp.asarray(raw["w4"]).T,       "b4": jnp.asarray(raw["b4"])[None, :],
        "w5": jnp.asarray(raw["w5"]).T,       "b5": jnp.asarray(raw["b5"])[None, :],
    }
    return raw, kp


# ----------------------------------------------------------------------------
# Pure-JAX reference (semantics check against the PyTorch forward)
# ----------------------------------------------------------------------------
def lenet_reference(x_nchw, raw):
    def conv(x, w, b):
        y = jax.lax.conv_general_dilated(
            x, w, window_strides=(1, 1), padding="VALID",
            dimension_numbers=("NCHW", "OIHW", "NCHW"))
        return y + b.reshape(1, -1, 1, 1)

    def pool(x):
        return jax.lax.reduce_window(x, -jnp.inf, jax.lax.max,
                                     (1, 1, 2, 2), (1, 1, 2, 2), "VALID")

    sig = lambda t: 1.0 / (1.0 + jnp.exp(-t))
    x = conv(x_nchw, raw["w1"], raw["b1"]); x = sig(x); x = pool(x); x = sig(x)
    x = conv(x, raw["w2"], raw["b2"]); x = pool(x)
    x = conv(x, raw["w3"], raw["b3"])
    x = x.reshape(x.shape[0], -1)
    x = x @ raw["w4"].T + raw["b4"]; x = sig(x)
    x = x @ raw["w5"].T + raw["b5"]
    return x


if __name__ == "__main__":
    key = jax.random.PRNGKey(0)
    k_x, k_p = jax.random.split(key)

    # Spatial size 28x28 is fixed by the architecture (conv3 must reduce to
    # 1x1 so the flattened feature dim equals fc1.in_features = 120).
    x = jax.random.normal(k_x, (2, 1, 28, 28), jnp.float32)
    raw_params, kernel_params = init_params(k_p, num_classes=10)

    out = jax.block_until_ready(lenet_forward(x, kernel_params))
    assert out.shape == (2, 10)

    ref = lenet_reference(x, raw_params)
    np.testing.assert_allclose(np.asarray(out), np.asarray(ref), rtol=2e-3, atol=2e-3)

    print("KERNEL_OK")
</pallas_src>

<mosaic_0001>
module attributes {stable_mosaic.version = 11 : i64} {
  func.func @_lenet_kernel(%arg0: i32, %arg1: memref<1x28x28xf32, #tpu.memory_space<vmem>>, %arg2: memref<5x28x144xf32, #tpu.memory_space<vmem>>, %arg3: memref<1x144xf32, #tpu.memory_space<vmem>>, %arg4: memref<2x12x24xf32, #tpu.memory_space<vmem>>, %arg5: memref<2x144x72xf32, #tpu.memory_space<vmem>>, %arg6: memref<5x72x128xf32, #tpu.memory_space<vmem>>, %arg7: memref<1x128xf32, #tpu.memory_space<vmem>>, %arg8: memref<2x4x8xf32, #tpu.memory_space<vmem>>, %arg9: memref<2x128x64xf32, #tpu.memory_space<vmem>>, %arg10: memref<4x64x120xf32, #tpu.memory_space<vmem>>, %arg11: memref<1x120xf32, #tpu.memory_space<vmem>>, %arg12: memref<120x64xf32, #tpu.memory_space<vmem>>, %arg13: memref<1x64xf32, #tpu.memory_space<vmem>>, %arg14: memref<64x10xf32, #tpu.memory_space<vmem>>, %arg15: memref<1x10xf32, #tpu.memory_space<vmem>>, %arg16: memref<1x1x10xf32, #tpu.memory_space<vmem>>) attributes {dimension_semantics = [#tpu.dimension_semantics<parallel>], iteration_bounds = array<i64: 2>, scalar_prefetch = 0 : i64, scratch_operands = 0 : i64, tpu.core_type = #tpu.core_type<tc>, window_params = [{transform_indices = @transform_0, window_bounds = array<i64: 1, 28, 28>}, {pipeline_mode = #tpu.pipeline_mode<synchronous>, transform_indices = @transform_1, window_bounds = array<i64: 5, 28, 144>}, {pipeline_mode = #tpu.pipeline_mode<synchronous>, transform_indices = @transform_2, window_bounds = array<i64: 1, 144>}, {pipeline_mode = #tpu.pipeline_mode<synchronous>, transform_indices = @transform_3, window_bounds = array<i64: 2, 12, 24>}, {pipeline_mode = #tpu.pipeline_mode<synchronous>, transform_indices = @transform_4, window_bounds = array<i64: 2, 144, 72>}, {pipeline_mode = #tpu.pipeline_mode<synchronous>, transform_indices = @transform_5, window_bounds = array<i64: 5, 72, 128>}, {pipeline_mode = #tpu.pipeline_mode<synchronous>, transform_indices = @transform_6, window_bounds = array<i64: 1, 128>}, {pipeline_mode = #tpu.pipeline_mode<synchronous>, transform_indices = @transform_7, window_bounds = array<i64: 2, 4, 8>}, {pipeline_mode = #tpu.pipeline_mode<synchronous>, transform_indices = @transform_8, window_bounds = array<i64: 2, 128, 64>}, {pipeline_mode = #tpu.pipeline_mode<synchronous>, transform_indices = @transform_9, window_bounds = array<i64: 4, 64, 120>}, {pipeline_mode = #tpu.pipeline_mode<synchronous>, transform_indices = @transform_10, window_bounds = array<i64: 1, 120>}, {pipeline_mode = #tpu.pipeline_mode<synchronous>, transform_indices = @transform_11, window_bounds = array<i64: 120, 64>}, {pipeline_mode = #tpu.pipeline_mode<synchronous>, transform_indices = @transform_12, window_bounds = array<i64: 1, 64>}, {pipeline_mode = #tpu.pipeline_mode<synchronous>, transform_indices = @transform_13, window_bounds = array<i64: 64, 10>}, {pipeline_mode = #tpu.pipeline_mode<synchronous>, transform_indices = @transform_14, window_bounds = array<i64: 1, 10>}, {transform_indices = @transform_15, window_bounds = array<i64: 1, 1, 10>}]} {
    %c0 = arith.constant 0 : index
    %c0_0 = arith.constant 0 : index
    %c0_1 = arith.constant 0 : index
    %0 = vector.load %arg1[%c0, %c0_0, %c0_1] : memref<1x28x28xf32, #tpu.memory_space<vmem>>, vector<1x28x28xf32>
    %1 = vector.shape_cast %0 : vector<1x28x28xf32> to vector<28x28xf32>
    %2 = vector.extract_strided_slice %1 {offsets = [0, 0], sizes = [24, 28], strides = [1, 1]} : vector<28x28xf32> to vector<24x28xf32>
    %c0_2 = arith.constant 0 : index
    %c0_3 = arith.constant 0 : index
    %c0_4 = arith.constant 0 : index
    %3 = vector.load %arg2[%c0_2, %c0_3, %c0_4] : memref<5x28x144xf32, #tpu.memory_space<vmem>>, vector<1x28x144xf32>
    %4 = vector.shape_cast %3 : vector<1x28x144xf32> to vector<28x144xf32>
    %cst = arith.constant dense<0.000000e+00> : vector<24x144xf32>
    %5 = tpu.matmul %2, %4, %cst {dimension_numbers = #tpu.dot_dimension_numbers<[1], [0], [0], [1], [0, 0, 1, 1], [], []>} : vector<24x28xf32>, vector<28x144xf32>, vector<24x144xf32> -> vector<24x144xf32>
    %6 = vector.extract_strided_slice %1 {offsets = [1, 0], sizes = [24, 28], strides = [1, 1]} : vector<28x28xf32> to vector<24x28xf32>
    %c1 = arith.constant 1 : index
    %c0_5 = arith.constant 0 : index
    %c0_6 = arith.constant 0 : index
    %7 = vector.load %arg2[%c1, %c0_5, %c0_6] : memref<5x28x144xf32, #tpu.memory_space<vmem>>, vector<1x28x144xf32>
    %8 = vector.shape_cast %7 : vector<1x28x144xf32> to vector<28x144xf32>
    %cst_7 = arith.constant dense<0.000000e+00> : vector<24x144xf32>
    %9 = tpu.matmul %6, %8, %cst_7 {dimension_numbers = #tpu.dot_dimension_numbers<[1], [0], [0], [1], [0, 0, 1, 1], [], []>} : vector<24x28xf32>, vector<28x144xf32>, vector<24x144xf32> -> vector<24x144xf32>
    %10 = arith.addf %5, %9 : vector<24x144xf32>
    %11 = vector.extract_strided_slice %1 {offsets = [2, 0], sizes = [24, 28], strides = [1, 1]} : vector<28x28xf32> to vector<24x28xf32>
    %c2 = arith.constant 2 : index
    %c0_8 = arith.constant 0 : index
    %c0_9 = arith.constant 0 : index
    %12 = vector.load %arg2[%c2, %c0_8, %c0_9] : memref<5x28x144xf32, #tpu.memory_space<vmem>>, vector<1x28x144xf32>
    %13 = vector.shape_cast %12 : vector<1x28x144xf32> to vector<28x144xf32>
    %cst_10 = arith.constant dense<0.000000e+00> : vector<24x144xf32>
    %14 = tpu.matmul %11, %13, %cst_10 {dimension_numbers = #tpu.dot_dimension_numbers<[1], [0], [0], [1], [0, 0, 1, 1], [], []>} : vector<24x28xf32>, vector<28x144xf32>, vector<24x144xf32> -> vector<24x144xf32>
    %15 = arith.addf %10, %14 : vector<24x144xf32>
    %16 = vector.extract_strided_slice %1 {offsets = [3, 0], sizes = [24, 28], strides = [1, 1]} : vector<28x28xf32> to vector<24x28xf32>
    %c3 = arith.constant 3 : index
    %c0_11 = arith.constant 0 : index
    %c0_12 = arith.constant 0 : index
    %17 = vector.load %arg2[%c3, %c0_11, %c0_12] : memref<5x28x144xf32, #tpu.memory_space<vmem>>, vector<1x28x144xf32>
    %18 = vector.shape_cast %17 : vector<1x28x144xf32> to vector<28x144xf32>
    %cst_13 = arith.constant dense<0.000000e+00> : vector<24x144xf32>
    %19 = tpu.matmul %16, %18, %cst_13 {dimension_numbers = #tpu.dot_dimension_numbers<[1], [0], [0], [1], [0, 0, 1, 1], [], []>} : vector<24x28xf32>, vector<28x144xf32>, vector<24x144xf32> -> vector<24x144xf32>
    %20 = arith.addf %15, %19 : vector<24x144xf32>
    %21 = vector.extract_strided_slice %1 {offsets = [4, 0], sizes = [24, 28], strides = [1, 1]} : vector<28x28xf32> to vector<24x28xf32>
    %c4 = arith.constant 4 : index
    %c0_14 = arith.constant 0 : index
    %c0_15 = arith.constant 0 : index
    %22 = vector.load %arg2[%c4, %c0_14, %c0_15] : memref<5x28x144xf32, #tpu.memory_space<vmem>>, vector<1x28x144xf32>
    %23 = vector.shape_cast %22 : vector<1x28x144xf32> to vector<28x144xf32>
    %cst_16 = arith.constant dense<0.000000e+00> : vector<24x144xf32>
    %24 = tpu.matmul %21, %23, %cst_16 {dimension_numbers = #tpu.dot_dimension_numbers<[1], [0], [0], [1], [0, 0, 1, 1], [], []>} : vector<24x28xf32>, vector<28x144xf32>, vector<24x144xf32> -> vector<24x144xf32>
    %25 = arith.addf %20, %24 : vector<24x144xf32>
    %c0_17 = arith.constant 0 : index
    %c0_18 = arith.constant 0 : index
    %26 = vector.load %arg3[%c0_17, %c0_18] : memref<1x144xf32, #tpu.memory_space<vmem>>, vector<1x144xf32>
    %27 = vector.broadcast %26 : vector<1x144xf32> to vector<24x144xf32>
    %28 = arith.addf %25, %27 : vector<24x144xf32>
    %cst_19 = arith.constant 0.000000e+00 : f32
    %29 = vector.broadcast %cst_19 : f32 to vector<24x144xf32>
    %30 = arith.subf %29, %28 : vector<24x144xf32>
    %31 = math.exp %30 : vector<24x144xf32>
    %cst_20 = arith.constant 1.000000e+00 : f32
    %32 = vector.broadcast %cst_20 : f32 to vector<24x144xf32>
    %33 = arith.addf %32, %31 : vector<24x144xf32>
    %cst_21 = arith.constant 1.000000e+00 : f32
    %34 = vector.broadcast %cst_21 : f32 to vector<24x144xf32>
    %35 = arith.divf %34, %33 : vector<24x144xf32>
    %c0_22 = arith.constant 0 : index
    %c0_23 = arith.constant 0 : index
    %c0_24 = arith.constant 0 : index
    %36 = vector.load %arg4[%c0_22, %c0_23, %c0_24] : memref<2x12x24xf32, #tpu.memory_space<vmem>>, vector<1x12x24xf32>
    %37 = vector.shape_cast %36 : vector<1x12x24xf32> to vector<12x24xf32>
    %cst_25 = arith.constant dense<0.000000e+00> : vector<12x144xf32>
    %38 = tpu.matmul %37, %35, %cst_25 {dimension_numbers = #tpu.dot_dimension_numbers<[1], [0], [0], [1], [0, 0, 1, 1], [], []>} : vector<12x24xf32>, vector<24x144xf32>, vector<12x144xf32> -> vector<12x144xf32>
    %c1_26 = arith.constant 1 : index
    %c0_27 = arith.constant 0 : index
    %c0_28 = arith.constant 0 : index
    %39 = vector.load %arg4[%c1_26, %c0_27, %c0_28] : memref<2x12x24xf32, #tpu.memory_space<vmem>>, vector<1x12x24xf32>
    %40 = vector.shape_cast %39 : vector<1x12x24xf32> to vector<12x24xf32>
    %cst_29 = arith.constant dense<0.000000e+00> : vector<12x144xf32>
    %41 = tpu.matmul %40, %35, %cst_29 {dimension_numbers = #tpu.dot_dimension_numbers<[1], [0], [0], [1], [0, 0, 1, 1], [], []>} : vector<12x24xf32>, vector<24x144xf32>, vector<12x144xf32> -> vector<12x144xf32>
    %42 = arith.maximumf %38, %41 : vector<12x144xf32>
    %c0_30 = arith.constant 0 : index
    %c0_31 = arith.constant 0 : index
    %c0_32 = arith.constant 0 : index
    %43 = vector.load %arg5[%c0_30, %c0_31, %c0_32] : memref<2x144x72xf32, #tpu.memory_space<vmem>>, vector<1x144x72xf32>
    %44 = vector.shape_cast %43 : vector<1x144x72xf32> to vector<144x72xf32>
    %cst_33 = arith.constant dense<0.000000e+00> : vector<12x72xf32>
    %45 = tpu.matmul %42, %44, %cst_33 {dimension_numbers = #tpu.dot_dimension_numbers<[1], [0], [0], [1], [0, 0, 1, 1], [], []>} : vector<12x144xf32>, vector<144x72xf32>, vector<12x72xf32> -> vector<12x72xf32>
    %c1_34 = arith.constant 1 : index
    %c0_35 = arith.constant 0 : index
    %c0_36 = arith.constant 0 : index
    %46 = vector.load %arg5[%c1_34, %c0_35, %c0_36] : memref<2x144x72xf32, #tpu.memory_space<vmem>>, vector<1x144x72xf32>
    %47 = vector.shape_cast %46 : vector<1x144x72xf32> to vector<144x72xf32>
    %cst_37 = arith.constant dense<0.000000e+00> : vector<12x72xf32>
    %48 = tpu.matmul %42, %47, %cst_37 {dimension_numbers = #tpu.dot_dimension_numbers<[1], [0], [0], [1], [0, 0, 1, 1], [], []>} : vector<12x144xf32>, vector<144x72xf32>, vector<12x72xf32> -> vector<12x72xf32>
    %49 = arith.maximumf %45, %48 : vector<12x72xf32>
    %cst_38 = arith.constant 0.000000e+00 : f32
    %50 = vector.broadcast %cst_38 : f32 to vector<12x72xf32>
    %51 = arith.subf %50, %49 : vector<12x72xf32>
    %52 = math.exp %51 : vector<12x72xf32>
    %cst_39 = arith.constant 1.000000e+00 : f32
    %53 = vector.broadcast %cst_39 : f32 to vector<12x72xf32>
    %54 = arith.addf %53, %52 : vector<12x72xf32>
    %cst_40 = arith.constant 1.000000e+00 : f32
    %55 = vector.broadcast %cst_40 : f32 to vector<12x72xf32>
    %56 = arith.divf %55, %54 : vector<12x72xf32>
    %57 = vector.extract_strided_slice %56 {offsets = [0, 0], sizes = [8, 72], strides = [1, 1]} : vector<12x72xf32> to vector<8x72xf32>
    %c0_41 = arith.constant 0 : index
    %c0_42 = arith.constant 0 : index
    %c0_43 = arith.constant 0 : index
    %58 = vector.load %arg6[%c0_41, %c0_42, %c0_43] : memref<5x72x128xf32, #tpu.memory_space<vmem>>, vector<1x72x128xf32>
    %59 = vector.shape_cast %58 : vector<1x72x128xf32> to vector<72x128xf32>
    %cst_44 = arith.constant dense<0.000000e+00> : vector<8x128xf32>
    %60 = tpu.matmul %57, %59, %cst_44 {dimension_numbers = #tpu.dot_dimension_numbers<[1], [0], [0], [1], [0, 0, 1, 1], [], []>} : vector<8x72xf32>, vector<72x128xf32>, vector<8x128xf32> -> vector<8x128xf32>
    %61 = vector.extract_strided_slice %56 {offsets = [1, 0], sizes = [8, 72], strides = [1, 1]} : vector<12x72xf32> to vector<8x72xf32>
    %c1_45 = arith.constant 1 : index
    %c0_46 = arith.constant 0 : index
    %c0_47 = arith.constant 0 : index
    %62 = vector.load %arg6[%c1_45, %c0_46, %c0_47] : memref<5x72x128xf32, #tpu.memory_space<vmem>>, vector<1x72x128xf32>
    %63 = vector.shape_cast %62 : vector<1x72x128xf32> to vector<72x128xf32>
    %cst_48 = arith.constant dense<0.000000e+00> : vector<8x128xf32>
    %64 = tpu.matmul %61, %63, %cst_48 {dimension_numbers = #tpu.dot_dimension_numbers<[1], [0], [0], [1], [0, 0, 1, 1], [], []>} : vector<8x72xf32>, vector<72x128xf32>, vector<8x128xf32> -> vector<8x128xf32>
    %65 = arith.addf %60, %64 : vector<8x128xf32>
    %66 = vector.extract_strided_slice %56 {offsets = [2, 0], sizes = [8, 72], strides = [1, 1]} : vector<12x72xf32> to vector<8x72xf32>
    %c2_49 = arith.constant 2 : index
    %c0_50 = arith.constant 0 : index
    %c0_51 = arith.constant 0 : index
    %67 = vector.load %arg6[%c2_49, %c0_50, %c0_51] : memref<5x72x128xf32, #tpu.memory_space<vmem>>, vector<1x72x128xf32>
    %68 = vector.shape_cast %67 : vector<1x72x128xf32> to vector<72x128xf32>
    %cst_52 = arith.constant dense<0.000000e+00> : vector<8x128xf32>
    %69 = tpu.matmul %66, %68, %cst_52 {dimension_numbers = #tpu.dot_dimension_numbers<[1], [0], [0], [1], [0, 0, 1, 1], [], []>} : vector<8x72xf32>, vector<72x128xf32>, vector<8x128xf32> -> vector<8x128xf32>
    %70 = arith.addf %65, %69 : vector<8x128xf32>
    %71 = vector.extract_strided_slice %56 {offsets = [3, 0], sizes = [8, 72], strides = [1, 1]} : vector<12x72xf32> to vector<8x72xf32>
    %c3_53 = arith.constant 3 : index
    %c0_54 = arith.constant 0 : index
    %c0_55 = arith.constant 0 : index
    %72 = vector.load %arg6[%c3_53, %c0_54, %c0_55] : memref<5x72x128xf32, #tpu.memory_space<vmem>>, vector<1x72x128xf32>
    %73 = vector.shape_cast %72 : vector<1x72x128xf32> to vector<72x128xf32>
    %cst_56 = arith.constant dense<0.000000e+00> : vector<8x128xf32>
    %74 = tpu.matmul %71, %73, %cst_56 {dimension_numbers = #tpu.dot_dimension_numbers<[1], [0], [0], [1], [0, 0, 1, 1], [], []>} : vector<8x72xf32>, vector<72x128xf32>, vector<8x128xf32> -> vector<8x128xf32>
    %75 = arith.addf %70, %74 : vector<8x128xf32>
    %76 = vector.extract_strided_slice %56 {offsets = [4, 0], sizes = [8, 72], strides = [1, 1]} : vector<12x72xf32> to vector<8x72xf32>
    %c4_57 = arith.constant 4 : index
    %c0_58 = arith.constant 0 : index
    %c0_59 = arith.constant 0 : index
    %77 = vector.load %arg6[%c4_57, %c0_58, %c0_59] : memref<5x72x128xf32, #tpu.memory_space<vmem>>, vector<1x72x128xf32>
    %78 = vector.shape_cast %77 : vector<1x72x128xf32> to vector<72x128xf32>
    %cst_60 = arith.constant dense<0.000000e+00> : vector<8x128xf32>
    %79 = tpu.matmul %76, %78, %cst_60 {dimension_numbers = #tpu.dot_dimension_numbers<[1], [0], [0], [1], [0, 0, 1, 1], [], []>} : vector<8x72xf32>, vector<72x128xf32>, vector<8x128xf32> -> vector<8x128xf32>
    %80 = arith.addf %75, %79 : vector<8x128xf32>
    %c0_61 = arith.constant 0 : index
    %c0_62 = arith.constant 0 : index
    %81 = vector.load %arg7[%c0_61, %c0_62] : memref<1x128xf32, #tpu.memory_space<vmem>>, vector<1x128xf32>
    %82 = vector.broadcast %81 : vector<1x128xf32> to vector<8x128xf32>
    %83 = arith.addf %80, %82 : vector<8x128xf32>
    %c0_63 = arith.constant 0 : index
    %c0_64 = arith.constant 0 : index
    %c0_65 = arith.constant 0 : index
    %84 = vector.load %arg8[%c0_63, %c0_64, %c0_65] : memref<2x4x8xf32, #tpu.memory_space<vmem>>, vector<1x4x8xf32>
    %85 = vector.shape_cast %84 : vector<1x4x8xf32> to vector<4x8xf32>
    %cst_66 = arith.constant dense<0.000000e+00> : vector<4x128xf32>
    %86 = tpu.matmul %85, %83, %cst_66 {dimension_numbers = #tpu.dot_dimension_numbers<[1], [0], [0], [1], [0, 0, 1, 1], [], []>} : vector<4x8xf32>, vector<8x128xf32>, vector<4x128xf32> -> vector<4x128xf32>
    %c1_67 = arith.constant 1 : index
    %c0_68 = arith.constant 0 : index
    %c0_69 = arith.constant 0 : index
    %87 = vector.load %arg8[%c1_67, %c0_68, %c0_69] : memref<2x4x8xf32, #tpu.memory_space<vmem>>, vector<1x4x8xf32>
    %88 = vector.shape_cast %87 : vector<1x4x8xf32> to vector<4x8xf32>
    %cst_70 = arith.constant dense<0.000000e+00> : vector<4x128xf32>
    %89 = tpu.matmul %88, %83, %cst_70 {dimension_numbers = #tpu.dot_dimension_numbers<[1], [0], [0], [1], [0, 0, 1, 1], [], []>} : vector<4x8xf32>, vector<8x128xf32>, vector<4x128xf32> -> vector<4x128xf32>
    %90 = arith.maximumf %86, %89 : vector<4x128xf32>
    %c0_71 = arith.constant 0 : index
    %c0_72 = arith.constant 0 : index
    %c0_73 = arith.constant 0 : index
    %91 = vector.load %arg9[%c0_71, %c0_72, %c0_73] : memref<2x128x64xf32, #tpu.memory_space<vmem>>, vector<1x128x64xf32>
    %92 = vector.shape_cast %91 : vector<1x128x64xf32> to vector<128x64xf32>
    %cst_74 = arith.constant dense<0.000000e+00> : vector<4x64xf32>
    %93 = tpu.matmul %90, %92, %cst_74 {dimension_numbers = #tpu.dot_dimension_numbers<[1], [0], [0], [1], [0, 0, 1, 1], [], []>} : vector<4x128xf32>, vector<128x64xf32>, vector<4x64xf32> -> vector<4x64xf32>
    %c1_75 = arith.constant 1 : index
    %c0_76 = arith.constant 0 : index
    %c0_77 = arith.constant 0 : index
    %94 = vector.load %arg9[%c1_75, %c0_76, %c0_77] : memref<2x128x64xf32, #tpu.memory_space<vmem>>, vector<1x128x64xf32>
    %95 = vector.shape_cast %94 : vector<1x128x64xf32> to vector<128x64xf32>
    %cst_78 = arith.constant dense<0.000000e+00> : vector<4x64xf32>
    %96 = tpu.matmul %90, %95, %cst_78 {dimension_numbers = #tpu.dot_dimension_numbers<[1], [0], [0], [1], [0, 0, 1, 1], [], []>} : vector<4x128xf32>, vector<128x64xf32>, vector<4x64xf32> -> vector<4x64xf32>
    %97 = arith.maximumf %93, %96 : vector<4x64xf32>
    %98 = vector.extract_strided_slice %97 {offsets = [0, 0], sizes = [1, 64], strides = [1, 1]} : vector<4x64xf32> to vector<1x64xf32>
    %c0_79 = arith.constant 0 : index
    %c0_80 = arith.constant 0 : index
    %c0_81 = arith.constant 0 : index
    %99 = vector.load %arg10[%c0_79, %c0_80, %c0_81] : memref<4x64x120xf32, #tpu.memory_space<vmem>>, vector<1x64x120xf32>
    %100 = vector.shape_cast %99 : vector<1x64x120xf32> to vector<64x120xf32>
    %cst_82 = arith.constant dense<0.000000e+00> : vector<1x120xf32>
    %101 = tpu.matmul %98, %100, %cst_82 {dimension_numbers = #tpu.dot_dimension_numbers<[1], [0], [0], [1], [0, 0, 1, 1], [], []>} : vector<1x64xf32>, vector<64x120xf32>, vector<1x120xf32> -> vector<1x120xf32>
    %102 = vector.extract_strided_slice %97 {offsets = [1, 0], sizes = [1, 64], strides = [1, 1]} : vector<4x64xf32> to vector<1x64xf32>
    %c1_83 = arith.constant 1 : index
    %c0_84 = arith.constant 0 : index
    %c0_85 = arith.constant 0 : index
    %103 = vector.load %arg10[%c1_83, %c0_84, %c0_85] : memref<4x64x120xf32, #tpu.memory_space<vmem>>, vector<1x64x120xf32>
    %104 = vector.shape_cast %103 : vector<1x64x120xf32> to vector<64x120xf32>
    %cst_86 = arith.constant dense<0.000000e+00> : vector<1x120xf32>
    %105 = tpu.matmul %102, %104, %cst_86 {dimension_numbers = #tpu.dot_dimension_numbers<[1], [0], [0], [1], [0, 0, 1, 1], [], []>} : vector<1x64xf32>, vector<64x120xf32>, vector<1x120xf32> -> vector<1x120xf32>
    %106 = arith.addf %101, %105 : vector<1x120xf32>
    %107 = vector.extract_strided_slice %97 {offsets = [2, 0], sizes = [1, 64], strides = [1, 1]} : vector<4x64xf32> to vector<1x64xf32>
    %c2_87 = arith.constant 2 : index
    %c0_88 = arith.constant 0 : index
    %c0_89 = arith.constant 0 : index
    %108 = vector.load %arg10[%c2_87, %c0_88, %c0_89] : memref<4x64x120xf32, #tpu.memory_space<vmem>>, vector<1x64x120xf32>
    %109 = vector.shape_cast %108 : vector<1x64x120xf32> to vector<64x120xf32>
    %cst_90 = arith.constant dense<0.000000e+00> : vector<1x120xf32>
    %110 = tpu.matmul %107, %109, %cst_90 {dimension_numbers = #tpu.dot_dimension_numbers<[1], [0], [0], [1], [0, 0, 1, 1], [], []>} : vector<1x64xf32>, vector<64x120xf32>, vector<1x120xf32> -> vector<1x120xf32>
    %111 = arith.addf %106, %110 : vector<1x120xf32>
    %112 = vector.extract_strided_slice %97 {offsets = [3, 0], sizes = [1, 64], strides = [1, 1]} : vector<4x64xf32> to vector<1x64xf32>
    %c3_91 = arith.constant 3 : index
    %c0_92 = arith.constant 0 : index
    %c0_93 = arith.constant 0 : index
    %113 = vector.load %arg10[%c3_91, %c0_92, %c0_93] : memref<4x64x120xf32, #tpu.memory_space<vmem>>, vector<1x64x120xf32>
    %114 = vector.shape_cast %113 : vector<1x64x120xf32> to vector<64x120xf32>
    %cst_94 = arith.constant dense<0.000000e+00> : vector<1x120xf32>
    %115 = tpu.matmul %112, %114, %cst_94 {dimension_numbers = #tpu.dot_dimension_numbers<[1], [0], [0], [1], [0, 0, 1, 1], [], []>} : vector<1x64xf32>, vector<64x120xf32>, vector<1x120xf32> -> vector<1x120xf32>
    %116 = arith.addf %111, %115 : vector<1x120xf32>
    %c0_95 = arith.constant 0 : index
    %c0_96 = arith.constant 0 : index
    %117 = vector.load %arg11[%c0_95, %c0_96] : memref<1x120xf32, #tpu.memory_space<vmem>>, vector<1x120xf32>
    %118 = arith.addf %116, %117 : vector<1x120xf32>
    %c0_97 = arith.constant 0 : index
    %c0_98 = arith.constant 0 : index
    %119 = vector.load %arg12[%c0_97, %c0_98] : memref<120x64xf32, #tpu.memory_space<vmem>>, vector<120x64xf32>
    %cst_99 = arith.constant dense<0.000000e+00> : vector<1x64xf32>
    %120 = tpu.matmul %118, %119, %cst_99 {dimension_numbers = #tpu.dot_dimension_numbers<[1], [0], [0], [1], [0, 0, 1, 1], [], []>} : vector<1x120xf32>, vector<120x64xf32>, vector<1x64xf32> -> vector<1x64xf32>
    %c0_100 = arith.constant 0 : index
    %c0_101 = arith.constant 0 : index
    %121 = vector.load %arg13[%c0_100, %c0_101] : memref<1x64xf32, #tpu.memory_space<vmem>>, vector<1x64xf32>
    %122 = arith.addf %120, %121 : vector<1x64xf32>
    %cst_102 = arith.constant 0.000000e+00 : f32
    %123 = vector.broadcast %cst_102 : f32 to vector<1x64xf32>
    %124 = arith.subf %123, %122 : vector<1x64xf32>
    %125 = math.exp %124 : vector<1x64xf32>
    %cst_103 = arith.constant 1.000000e+00 : f32
    %126 = vector.broadcast %cst_103 : f32 to vector<1x64xf32>
    %127 = arith.addf %126, %125 : vector<1x64xf32>
    %cst_104 = arith.constant 1.000000e+00 : f32
    %128 = vector.broadcast %cst_104 : f32 to vector<1x64xf32>
    %129 = arith.divf %128, %127 : vector<1x64xf32>
    %c0_105 = arith.constant 0 : index
    %c0_106 = arith.constant 0 : index
    %130 = vector.load %arg14[%c0_105, %c0_106] : memref<64x10xf32, #tpu.memory_space<vmem>>, vector<64x10xf32>
    %cst_107 = arith.constant dense<0.000000e+00> : vector<1x10xf32>
    %131 = tpu.matmul %129, %130, %cst_107 {dimension_numbers = #tpu.dot_dimension_numbers<[1], [0], [0], [1], [0, 0, 1, 1], [], []>} : vector<1x64xf32>, vector<64x10xf32>, vector<1x10xf32> -> vector<1x10xf32>
    %c0_108 = arith.constant 0 : index
    %c0_109 = arith.constant 0 : index
    %132 = vector.load %arg15[%c0_108, %c0_109] : memref<1x10xf32, #tpu.memory_space<vmem>>, vector<1x10xf32>
    %133 = arith.addf %131, %132 : vector<1x10xf32>
    %c0_110 = arith.constant 0 : index
    %c0_111 = arith.constant 0 : index
    %c0_112 = arith.constant 0 : index
    %134 = vector.load %arg16[%c0_110, %c0_111, %c0_112] : memref<1x1x10xf32, #tpu.memory_space<vmem>>, vector<1x1x10xf32>
    %135 = vector.shape_cast %134 : vector<1x1x10xf32> to vector<1x10xf32>
    %136 = vector.shape_cast %133 : vector<1x10xf32> to vector<1x1x10xf32>
    tpu.vector_store %arg16[%c0_110, %c0_111, %c0_112], %136 {strides = array<i32>} : memref<1x1x10xf32, #tpu.memory_space<vmem>>, vector<1x1x10xf32>,
    return
  }
  func.func @transform_0(%arg0: i32) -> (i32, i32, i32) {
    %c0_i32 = arith.constant 0 : i32
    %c0_i32_0 = arith.constant 0 : i32
    %c0_i32_1 = arith.constant 0 : i32
    return %arg0, %c0_i32, %c0_i32_0 : i32, i32, i32
  }
  func.func @transform_1(%arg0: i32) -> (i32, i32, i32) {
    %c0_i32 = arith.constant 0 : i32
    %c0_i32_0 = arith.constant 0 : i32
    %c0_i32_1 = arith.constant 0 : i32
    %c0_i32_2 = arith.constant 0 : i32
    return %c0_i32, %c0_i32_0, %c0_i32_1 : i32, i32, i32
  }
  func.func @transform_2(%arg0: i32) -> (i32, i32) {
    %c0_i32 = arith.constant 0 : i32
    %c0_i32_0 = arith.constant 0 : i32
    %c0_i32_1 = arith.constant 0 : i32
    return %c0_i32, %c0_i32_0 : i32, i32
  }
  func.func @transform_3(%arg0: i32) -> (i32, i32, i32) {
    %c0_i32 = arith.constant 0 : i32
    %c0_i32_0 = arith.constant 0 : i32
    %c0_i32_1 = arith.constant 0 : i32
    %c0_i32_2 = arith.constant 0 : i32
    return %c0_i32, %c0_i32_0, %c0_i32_1 : i32, i32, i32
  }
  func.func @transform_4(%arg0: i32) -> (i32, i32, i32) {
    %c0_i32 = arith.constant 0 : i32
    %c0_i32_0 = arith.constant 0 : i32
    %c0_i32_1 = arith.constant 0 : i32
    %c0_i32_2 = arith.constant 0 : i32
    return %c0_i32, %c0_i32_0, %c0_i32_1 : i32, i32, i32
  }
  func.func @transform_5(%arg0: i32) -> (i32, i32, i32) {
    %c0_i32 = arith.constant 0 : i32
    %c0_i32_0 = arith.constant 0 : i32
    %c0_i32_1 = arith.constant 0 : i32
    %c0_i32_2 = arith.constant 0 : i32
    return %c0_i32, %c0_i32_0, %c0_i32_1 : i32, i32, i32
  }
  func.func @transform_6(%arg0: i32) -> (i32, i32) {
    %c0_i32 = arith.constant 0 : i32
    %c0_i32_0 = arith.constant 0 : i32
    %c0_i32_1 = arith.constant 0 : i32
    return %c0_i32, %c0_i32_0 : i32, i32
  }
  func.func @transform_7(%arg0: i32) -> (i32, i32, i32) {
    %c0_i32 = arith.constant 0 : i32
    %c0_i32_0 = arith.constant 0 : i32
    %c0_i32_1 = arith.constant 0 : i32
    %c0_i32_2 = arith.constant 0 : i32
    return %c0_i32, %c0_i32_0, %c0_i32_1 : i32, i32, i32
  }
  func.func @transform_8(%arg0: i32) -> (i32, i32, i32) {
    %c0_i32 = arith.constant 0 : i32
    %c0_i32_0 = arith.constant 0 : i32
    %c0_i32_1 = arith.constant 0 : i32
    %c0_i32_2 = arith.constant 0 : i32
    return %c0_i32, %c0_i32_0, %c0_i32_1 : i32, i32, i32
  }
  func.func @transform_9(%arg0: i32) -> (i32, i32, i32) {
    %c0_i32 = arith.constant 0 : i32
    %c0_i32_0 = arith.constant 0 : i32
    %c0_i32_1 = arith.constant 0 : i32
    %c0_i32_2 = arith.constant 0 : i32
    return %c0_i32, %c0_i32_0, %c0_i32_1 : i32, i32, i32
  }
  func.func @transform_10(%arg0: i32) -> (i32, i32) {
    %c0_i32 = arith.constant 0 : i32
    %c0_i32_0 = arith.constant 0 : i32
    %c0_i32_1 = arith.constant 0 : i32
    return %c0_i32, %c0_i32_0 : i32, i32
  }
  func.func @transform_11(%arg0: i32) -> (i32, i32) {
    %c0_i32 = arith.constant 0 : i32
    %c0_i32_0 = arith.constant 0 : i32
    %c0_i32_1 = arith.constant 0 : i32
    return %c0_i32, %c0_i32_0 : i32, i32
  }
  func.func @transform_12(%arg0: i32) -> (i32, i32) {
    %c0_i32 = arith.constant 0 : i32
    %c0_i32_0 = arith.constant 0 : i32
    %c0_i32_1 = arith.constant 0 : i32
    return %c0_i32, %c0_i32_0 : i32, i32
  }
  func.func @transform_13(%arg0: i32) -> (i32, i32) {
    %c0_i32 = arith.constant 0 : i32
    %c0_i32_0 = arith.constant 0 : i32
    %c0_i32_1 = arith.constant 0 : i32
    return %c0_i32, %c0_i32_0 : i32, i32
  }
  func.func @transform_14(%arg0: i32) -> (i32, i32) {
    %c0_i32 = arith.constant 0 : i32
    %c0_i32_0 = arith.constant 0 : i32
    %c0_i32_1 = arith.constant 0 : i32
    return %c0_i32, %c0_i32_0 : i32, i32
  }
  func.func @transform_15(%arg0: i32) -> (i32, i32, i32) {
    %c0_i32 = arith.constant 0 : i32
    %c0_i32_0 = arith.constant 0 : i32
    %c0_i32_1 = arith.constant 0 : i32
    return %arg0, %c0_i32, %c0_i32_0 : i32, i32, i32
  }
}

</mosaic_0001>

<bundles_post_ra>
// kernel: lenet_forward.1
= control target key start
LH: loop header
LB: loop body
LE: loop exit
PB: predicated region body
PF: predicated region fallthrough
CT: control target
= control target key end

     0   :  { %s5504_s0 = inlined_call_operand.vmem [shape: f32[2,28,28], index: 0, kind: input, shape index: {}]   ;;  %s5505_s1 = inlined_call_operand.vmem [shape: f32[5,28,144], index: 1, kind: input, shape index: {}]   ;;  %s5506_s2 = inlined_call_operand.hbm [shape: f32[1,144], index: 2, kind: input, shape index: {}]   ;;  %s5507_s3 = inlined_call_operand.vmem [shape: f32[2,12,24], index: 3, kind: input, shape index: {}]   ;;  %s5508_s4 = inlined_call_operand.vmem [shape: f32[2,144,72], index: 4, kind: input, shape index: {}]   ;;  %s5509_s5 = inlined_call_operand.vmem [shape: f32[5,72,128], index: 5, kind: input, shape index: {}]   ;;  %s5510_s6 = inlined_call_operand.vmem [shape: f32[1,128], index: 6, kind: input, shape index: {}]   ;;  %s5511_s7 = inlined_call_operand.hbm [shape: f32[2,4,8], index: 7, kind: input, shape index: {}]   ;;  %s5512_s8 = inlined_call_operand.vmem [shape: f32[2,128,64], index: 8, kind: input, shape index: {}]   ;;  %s5513_s9 = inlined_call_operand.hbm [shape: f32[4,64,120], index: 9, kind: input, shape index: {}]   ;;  %s5514_s10 = inlined_call_operand.hbm [shape: f32[1,120], index: 10, kind: input, shape index: {}]   ;;  %s5515_s11 = inlined_call_operand.vmem [shape: f32[120,64], index: 11, kind: input, shape index: {}]   ;;  %s5516_s12 = inlined_call_operand.hbm [shape: f32[1,64], index: 12, kind: input, shape index: {}]   ;;  %s5517_s13 = inlined_call_operand.vmem [shape: f32[64,10], index: 13, kind: input, shape index: {}]   ;;  %s5518_s14 = inlined_call_operand.hbm [shape: f32[1,10], index: 14, kind: input, shape index: {}]   ;;  %s5519_s15 = inlined_call_operand.hbm [shape: f32[2,1,10], index: 15, kind: output, shape index: {}]  }
   0x1   :  { %5535 = sst [smem:[#allocation27_spill]] %s5515_s11 }
   0x2   :  { %5536 = sst [smem:[#allocation28_spill]] %s5517_s13 }
   0x3   :  { %5537 = sst [smem:[#allocation29_spill]] %s5519_s15 }
   0x4   :  { %20 = vsyncpa [#allocation3], 0 }
   0x5   :  { %21 = vsyncpa [#allocation6], 0 }
   0x6   :  { %22 = vsyncpa [#allocation9], 0 }
   0x7   :  { %23 = vsyncpa [#allocation12], 0 }
   0x8   :  { %24 = vsyncpa [#allocation4], 0 }
   0x9   :  { %26 = vsyncpa [#allocation4 + $0x1], 0  ;;  %s4435_s18 = smov 0   ;;  %s4437_s19 = smov 0  }
   0xa   :  { %s4439_s20 = smov 0   ;;  %s4441_s21 = smov 0  }
   0xb LB: > { %5538 = sst [smem:[#allocation19_spill]] %s4326_s18  ;;  %s4456_s22 = sadd.s32 4294967295, %s4338_s21   ;;  %s4338_s21 = sphi %s4441_s21, %s5573_s21   ;;  %s4334_s20 = sphi %s4439_s20, %s5576_s20   ;;  %s4330_s19 = sphi %s4437_s19, %s5575_s19   ;;  %s4326_s18 = sphi %s4435_s18, %s5574_s18  }
   0xc   : > { %5539 = sst [smem:[#allocation20_spill]] %s4330_s19  ;;  %s2988_s23 = sadd.s32 4294967294, %s4338_s21  }
   0xd   : > { %5540 = sst [smem:[#allocation21_spill]] %s4334_s20  ;;  %s4460_s24 = sadd.s32 1, %s4338_s21  }
   0xe   : > { %5541 = sst [smem:[#allocation22_spill]] %s4338_s21  ;;  %s359_s25 = sadd.s32 1, %s4334_s20 }
   0xf   : > { %5542 = sst [smem:[#allocation23_spill]] %s4460_s24  ;;  %s356_s26 = ssub.s32 %s4338_s21, %s4460_s24 }
  0x10   : > { %p369_p0 = scmp.ne.s32.totalorder %s4334_s20, %s4330_s19  ;;  %p357_p1 = scmp.eq.s32.totalorder %s356_s26, 0 }
  0x11   : > { %p370_p2 = scmp.eq.s32.totalorder %s4456_s22, 1  ;;  %p375_p3 = scmp.ne.s32.totalorder %s4330_s19, %s4326_s18 }
  0x12   : > { %p376_p4 = scmp.eq.s32.totalorder %s2988_s23, 1  ;;  %p2989_p7 = scmp.ge.s32.totalorder %s4338_s21, 1 }
  0x13   : > { %s4471_s27 = scalar_select %p357_p1, %s4334_s20, %s359_s25  }
  0x14   : > { %p4473_p5 = por %p370_p2, %p369_p0  ;;  %p4477_p6 = por %p376_p4, %p375_p3 }
  0x15   : > { %5543 = sst [smem:[#allocation24_spill]] %s4471_s27  ;;  %p383_p8 = scmp.lt.s32.totalorder %s4338_s21, 3 }
  0x16   : > { %s5544_s28 = scalar_select %p4473_p5, 1, 0 }
  0x17   : > { %s5546_s29 = scalar_select %p4477_p6, 1, 0 }
  0x18   : > { %5545 = sst [smem:[#allocation25_spill]] %s5544_s28  ;;  %p5527_p9 = scmp.eq.s32.totalorder %s4456_s22, 0 }
  0x19   : > { %5547 = sst [smem:[#allocation26_spill]] %s5546_s29  ;;  %p4484_p10 = pnand %p2989_p7, %p383_p8 }
  0x1a   : > { %s4340_s16 = smov [#allocation5]   ;;  %s4341_s25 = smov [#allocation8]  }
  0x1b   : > { %s5548_s30 = scalar_select %p4484_p10, 1, 0 }
  0x1c   : > { %s421_s17 = sshll.u32 %s4340_s16, 4  ;;  %p3974_p11 = pneg %p4484_p10  ;;  %s4490_s17 = int_to_ptr.vmem [resolvable:$true] %s421_s17 }
  0x1d   : > { %s451_s26 = sshll.u32 %s4341_s25, 4  ;;  %s4342_s27 = smov [#allocation2]   ;;  %s4498_s26 = int_to_ptr.vmem [resolvable:$true] %s451_s26 }
  0x1e   : > { %p4494_p12 = pnand %p5527_p9, %p3974_p11  ;;  %s4500_s20 = sshll.u32 %s4342_s27, 4  ;;  %s400_s20 = int_to_ptr.vmem [resolvable:$true] %s4500_s20 }
  0x1f   : > { %s4092_s16 = scalar_lea.hbm %s5511_s7, 128 }
  0x20   : > { %p4093_p13 = scmp.ne.s32.totalorder %s5511_s7, %s4092_s16  ;;  %p4510_p0 = pneg %p4494_p12 }
  0x21   : > { %p4099_p3 = scmp.lt.u32.totalorder %s4092_s16, %s5511_s7 }
  0x22   : > { %p4095_p1 = pnand %p4510_p0, %p4093_p13 }
  0x24   : > { %p4096_p2 = pneg %p4095_p1 }
  0x26   : > { %p4101_p4 = pnand %p4099_p3, %p4096_p2 }
  0x28   : > { %4104 = shalt.err (!%p4101_p4)
}
  0x29   : > { %s4105_s18 = scalar_lea.vmem %s4490_s17, 128  ;;  %p4113_p9 = scmp.lt.s32.totalorder %s4490_s17, %s4490_s17 }
  0x2a   : > { %p4106_p7 = scmp.ne.s32.totalorder %s4490_s17, %s4105_s18  ;;  %p4114_p6 = scmp.lt.s32.totalorder %s4105_s18, %s4105_s18 }
  0x2c   : > { %p4108_p8 = pnand %p4106_p7, %p4510_p0  ;;  %p4115_p13 = por %p4114_p6, %p4113_p9 }
  0x2e   : > { %p4109_p11 = pneg %p4108_p8 }
  0x30   : > { %p4116_p1 = pnand %p4115_p13, %p4109_p11 }
  0x32   : > { %4119 = shalt.err (!%p4116_p1)
}
  0x33   : > { %s4343_s21 = smov 64   ;;  %s4344_s24 = smov 4  }
  0x34   : > { %3980 = dma.hbm_to_vmem [thread:$0]  (!%p4494_p12), %s5511_s7, 128, %s4490_s17, [#allocation6], %s4343_s21, %s4343_s21, %s4344_s24  }
  0x35   : > { %s4120_s28 = scalar_lea.hbm %s5514_s10, 16 }
  0x36   : > { %p4121_p6 = scmp.ne.s32.totalorder %s5514_s10, %s4120_s28  ;;  %p4127_p3 = scmp.lt.u32.totalorder %s4120_s28, %s5514_s10 }
  0x38   : > { %p4123_p9 = pnand %p4121_p6, %p4510_p0 }
  0x3a   : > { %p4124_p2 = pneg %p4123_p9 }
  0x3c   : > { %p4129_p4 = pnand %p4127_p3, %p4124_p2 }
  0x3e   : > { %4132 = shalt.err (!%p4129_p4)
}
  0x3f   : > { %s4133_s17 = scalar_lea.vmem %s4498_s26, 16  ;;  %s4140_s13 = scalar_lea.vmem %s4498_s26, 32 }
  0x40   : > { %p4134_p7 = scmp.ne.s32.totalorder %s4498_s26, %s4133_s17  ;;  %p4141_p13 = scmp.lt.s32.totalorder %s4498_s26, %s4498_s26 }
  0x41   : > { %p4142_p1 = scmp.lt.s32.totalorder %s4140_s13, %s4133_s17 }
  0x42   : > { %p4136_p8 = pnand %p4134_p7, %p4510_p0 }
  0x43   : > { %p4143_p6 = por %p4142_p1, %p4141_p13 }
  0x44   : > { %p4137_p11 = pneg %p4136_p8 }
  0x46   : > { %p4144_p9 = pnand %p4143_p6, %p4137_p11 }
  0x48   : > { %4147 = shalt.err (!%p4144_p9)
}
  0x49   : > { %3986 = dma.hbm_to_vmem [thread:$0]  (!%p4494_p12), %s5514_s10, 16, %s4498_s26, [#allocation9]  }
  0x4a   : > { %s4148_s24 = scalar_lea.hbm %s5506_s2, 32 }
  0x4b   : > { %p4149_p2 = scmp.ne.s32.totalorder %s5506_s2, %s4148_s24  ;;  %p4155_p7 = scmp.lt.u32.totalorder %s4148_s24, %s5506_s2 }
  0x4d   : > { %p4151_p3 = pnand %p4149_p2, %p4510_p0 }
  0x4f   : > { %p4152_p4 = pneg %p4151_p3 }
  0x51   : > { %p4157_p8 = pnand %p4155_p7, %p4152_p4 }
  0x53   : > { %4160 = shalt.err (!%p4157_p8)
}
  0x54   : > { %s4161_s18 = scalar_lea.vmem %s400_s20, 32  ;;  %p4169_p6 = scmp.lt.s32.totalorder %s400_s20, %s400_s20 }
  0x55   : > { %p4162_p11 = scmp.ne.s32.totalorder %s400_s20, %s4161_s18  ;;  %p4170_p9 = scmp.lt.s32.totalorder %s4161_s18, %s4161_s18 }
  0x57   : > { %p4164_p13 = pnand %p4162_p11, %p4510_p0  ;;  %p4171_p5 = por %p4170_p9, %p4169_p6 }
  0x59   : > { %p4165_p1 = pneg %p4164_p13 }
  0x5b   : > { %p4172_p10 = pnand %p4171_p5, %p4165_p1 }
  0x5d   : > { %4175 = shalt.err (!%p4172_p10)
}
  0x5e   : > { %3977 = dma.hbm_to_vmem [thread:$0]  (!%p4494_p12), %s5506_s2, 32, %s400_s20, [#allocation3]  }
  0x5f   : > { %s4345_s13 = smov [#allocation7]   ;;  %s4176_s21 = scalar_lea.hbm %s5513_s9, 4096 }
  0x60   : > { %s437_s11 = sshll.u32 %s4345_s13, 4  ;;  %p4177_p2 = scmp.ne.s32.totalorder %s5513_s9, %s4176_s21  ;;  %s438_s11 = int_to_ptr.vmem [resolvable:$true] %s437_s11 }
  0x61   : > { %p4183_p3 = scmp.lt.u32.totalorder %s4176_s21, %s5513_s9 }
  0x62   : > { %p4179_p5 = pnand %p4177_p2, %p4510_p0 }
  0x64   : > { %p4180_p10 = pneg %p4179_p5 }
  0x66   : > { %p4185_p4 = pnand %p4183_p3, %p4180_p10 }
  0x68   : > { %4188 = shalt.err (!%p4185_p4)
}
  0x69   : > { %s4189_s20 = scalar_lea.vmem %s438_s11, 4096  ;;  %p4197_p13 = scmp.lt.s32.totalorder %s438_s11, %s438_s11 }
  0x6a   : > { %p4190_p7 = scmp.ne.s32.totalorder %s438_s11, %s4189_s20  ;;  %p4198_p1 = scmp.lt.s32.totalorder %s4189_s20, %s4189_s20 }
  0x6c   : > { %p4192_p8 = pnand %p4190_p7, %p4510_p0  ;;  %p4199_p6 = por %p4198_p1, %p4197_p13 }
  0x6e   : > { %p4193_p11 = pneg %p4192_p8 }
  0x70   : > { %p4200_p9 = pnand %p4199_p6, %p4193_p11 }
  0x72   : > { %4203 = shalt.err (!%p4200_p9)
}
  0x73   : > { %s4346_s27 = smov 128   ;;  %s4347_s18 = smov 8  }
  0x74   : > { %3983 = dma.hbm_to_vmem [thread:$0]  (!%p4494_p12), %s5513_s9, 4096, %s438_s11, [#allocation6], %s4346_s27, %s4346_s27, %s4347_s18  }
  0x75   : > { %s4348_s13 = smov [#allocation10]   ;;  %s4349_s28 = smov [#allocation11]  }
  0x76   : > { %s465_s19 = sshll.u32 %s4348_s13, 4  ;;  %s479_s21 = sshll.u32 %s4349_s28, 4  ;;  %s466_s19 = int_to_ptr.vmem [resolvable:$true] %s465_s19  ;;  %s4592_s21 = int_to_ptr.vmem [resolvable:$true] %s479_s21 }
  0x77   : > { %s4204_s16 = scalar_lea.hbm %s5516_s12, 16 }
  0x78   : > { %p4205_p2 = scmp.ne.s32.totalorder %s5516_s12, %s4204_s16  ;;  %p4211_p3 = scmp.lt.u32.totalorder %s4204_s16, %s5516_s12 }
  0x7a   : > { %p4207_p5 = pnand %p4205_p2, %p4510_p0 }
  0x7c   : > { %p4208_p10 = pneg %p4207_p5 }
  0x7e   : > { %p4213_p4 = pnand %p4211_p3, %p4208_p10 }
  0x80   : > { %4216 = shalt.err (!%p4213_p4)
}
  0x81   : > { %s4217_s27 = scalar_lea.vmem %s466_s19, 16  ;;  %s4224_s18 = scalar_lea.vmem %s466_s19, 32 }
  0x82   : > { %p4218_p7 = scmp.ne.s32.totalorder %s466_s19, %s4217_s27  ;;  %p4225_p13 = scmp.lt.s32.totalorder %s466_s19, %s466_s19 }
  0x83   : > { %p4226_p1 = scmp.lt.s32.totalorder %s4224_s18, %s4217_s27 }
  0x84   : > { %p4220_p8 = pnand %p4218_p7, %p4510_p0 }
  0x85   : > { %p4227_p6 = por %p4226_p1, %p4225_p13 }
  0x86   : > { %p4221_p11 = pneg %p4220_p8 }
  0x88   : > { %p4228_p9 = pnand %p4227_p6, %p4221_p11 }
  0x8a   : > { %4231 = shalt.err (!%p4228_p9)
}
  0x8b   : > { %3989 = dma.hbm_to_vmem [thread:$0]  (!%p4494_p12), %s5516_s12, 16, %s466_s19, [#allocation9]  }
  0x8c   : > { %s4232_s29 = scalar_lea.hbm %s5518_s14, 16 }
  0x8d   : > { %p4233_p2 = scmp.ne.s32.totalorder %s5518_s14, %s4232_s29  ;;  %p4239_p3 = scmp.lt.u32.totalorder %s4232_s29, %s5518_s14 }
  0x8f   : > { %p4235_p5 = pnand %p4233_p2, %p4510_p0 }
  0x91   : > { %p4236_p10 = pneg %p4235_p5 }
  0x93   : > { %p4241_p4 = pnand %p4239_p3, %p4236_p10 }
  0x95   : > { %4244 = shalt.err (!%p4241_p4)
}
  0x96   : > { %s4245_s19 = scalar_lea.vmem %s4592_s21, 16  ;;  %s4252_s11 = scalar_lea.vmem %s4592_s21, 32 }
  0x97   : > { %p4246_p7 = scmp.ne.s32.totalorder %s4592_s21, %s4245_s19  ;;  %p4253_p13 = scmp.lt.s32.totalorder %s4592_s21, %s4592_s21 }
  0x98   : > { %p4254_p1 = scmp.lt.s32.totalorder %s4252_s11, %s4245_s19 }
  0x99   : > { %p4248_p8 = pnand %p4246_p7, %p4510_p0 }
  0x9a   : > { %p4255_p6 = por %p4254_p1, %p4253_p13 }
  0x9b   : > { %p4249_p11 = pneg %p4248_p8 }
  0x9d   : > { %p4256_p9 = pnand %p4255_p6, %p4249_p11 }
  0x9f   : > { %4259 = shalt.err (!%p4256_p9)
}
  0xa0   : > { %3992 = dma.hbm_to_vmem [thread:$0]  (!%p4494_p12), %s5518_s14, 16, %s4592_s21, [#allocation12]  }
  0xa1   : > { %p5551_p2 = scmp.ne.s32.totalorder %s5548_s30, 0 }
  0xa2   : > { %p5552_p0 = scmp.eq.s32.totalorder (!%p5551_p2), %s4456_s22, 0 }
  0xa3   : > { %500 = sbr.rel (%p5551_p2) target bundleno = 2392 (0x958), region = 80 }
  0xaa   : > { %4305 = dma.done.wait (%p5552_p0), [#allocation3], 32   ;;  %p5553_p5 = pmov %p5552_p0 }
  0xab   : > { %p5554_p10 = pmov %p5552_p0 }
  0xac   : > { %4307 = vsyncadd (%p5553_p5), [#allocation3], 4294967264 }
  0xad   : > { %4309 = dma.done.wait (%p5554_p10), [#allocation6], 4224   ;;  %p5555_p3 = pmov %p5552_p0 }
  0xae   : > { %p5556_p4 = pmov %p5552_p0 }
  0xaf   : > { %4311 = vsyncadd (%p5555_p3), [#allocation6], 4294963072 }
  0xb0   : > { %4313 = dma.done.wait (%p5556_p4), [#allocation9], 32   ;;  %p5557_p12 = pmov %p5552_p0 }
  0xb1   : > { %p5558_p7 = pmov %p5552_p0 }
  0xb2   : > { %4315 = vsyncadd (%p5557_p12), [#allocation9], 4294967264 }
  0xb3   : > { %4317 = dma.done.wait (%p5558_p7), [#allocation12], 16   ;;  %p5559_p8 = pmov %p5552_p0 }
  0xb4   : > { %p567_p11 = scmp.lt.s32.totalorder %s4456_s22, 1  ;;  %v4350_v0 = vmov 0.0   ;;  %vm612_vm0 = vcmask 1043456   ;;  %vm4351_vm1 = vmmov 1   ;;  %v3007_v2 = vld [vmem:[%s5505_s1 + $0x48] sm:$0xff]  ;;  %v3009_v3 = vld [vmem:[%s5505_s1 + $0x58] sm:$0xff] }
  0xb5   : > { %4319 = vsyncadd (%p5559_p8), [#allocation12], 4294967280  ;;  %683 = vmatprep.mubr.f32.mxu0 %v4350_v0  ;;  %1277 = vmatprep.mubr.f32.mxu1 %v4350_v0  ;;  %v3006_v4 = vld [vmem:[%s5505_s1 + $0x40] sm:$0xff]  ;;  %v3623_v5 = vpack.c.bf16 %v3009_v3, %v3007_v2  ;;  %v3008_v6 = vld [vmem:[%s5505_s1 + $0x50] sm:$0xff]  ;;  %vm597_vm3 = vcmask 1046528   ;;  %vm605_vm4 = vcmask 228352  }
  0xb6   : > { %s568_s15 = scalar_select %p567_p11, %s4456_s22, 1  ;;  %vm4659_vm2 = vmpackc.low %vm612_vm0, %vm4351_vm1  ;;  %v3011_v7 = vld [vmem:[%s5505_s1 + $0x68] sm:$0xff]  ;;  %v3013_v8 = vld [vmem:[%s5505_s1 + $0x78] sm:$0xf]  ;;  %v3625_v9 = vpack.c.bf16 %v3008_v6, %v3006_v4  ;;  %vm806_vm5 = vcmask 1045504   ;;  %vm924_vm6 = vcmask 1044480  }
  0xb7   : > { %v3627_v10 = vpack.c.bf16 %v3013_v8, %v3011_v7  ;;  %v3010_v11 = vld [vmem:[%s5505_s1 + $0x60] sm:$0xff]  ;;  %v3012_v12 = vld [vmem:[%s5505_s1 + $0x70] sm:$0xf]  ;;  %3624 = vmatprep.subr.bf16.mxu0 %v3623_v5  ;;  %v577_v15 = vld [vmem:[%s5505_s1 + $0x8] sm:$0xff]  ;;  %vm1206_vm7 = vcmask 195584   ;;  %vm1398_vm8 = vcmask 130048  }
  0xb8   : > { %s3160_s30 = sshll.u32 %s568_s15, 5  ;;  %v579_v16 = vld [vmem:[%s5505_s1 + $0x18] sm:$0xff]  ;;  %3626 = vmatpush1.bf16.msra.mxu0 %v3625_v9  ;;  %v3630_v17 = vpack.c.bf16 %v3012_v12, %v3010_v11  ;;  %v576_v21 = vld [vmem:[%s5505_s1] sm:$0xff]  ;;  %v578_v22 = vld [vmem:[%s5505_s1 + $0x10] sm:$0xff]  ;;  %vm4353_vm9 = vmmov 0   ;;  %vm1612_vm10 = vcmask 588800  }
  0xb9   : > { %s4666_s17 = scalar_lea.vmem %s5504_s0, %s3160_s30  ;;  %3629 = vmatprep.subr.msk.bf16.mxu0 %vm4659_vm2, %v3627_v10  ;;  %v3633_v20 = vpack.c.bf16 %v579_v16, %v577_v15  ;;  %v581_v24 = vld [vmem:[%s5505_s1 + $0x28] sm:$0xff]  ;;  %v583_v25 = vld [vmem:[%s5505_s1 + $0x38] sm:$0xf]  ;;  %v3635_v27 = vpack.c.bf16 %v578_v22, %v576_v21  ;;  %v580_v31 = vld [vmem:[%s5505_s1 + $0x20] sm:$0xff]  ;;  %vm2024_vm11 = vcmask 64512   ;;  %vm2367_vm12 = vcmask 523264  }
  0xba   : > { %v4693_v13 = vld [vmem:[%s4666_s17] sm:$0xff]  ;;  %v4696_v14 = vld [vmem:[%s4666_s17 + $0x8] sm:$0xff]  ;;  %v4715_v23 = vld [vmem:[%s4666_s17 + $0x10] sm:$0xff]  ;;  %v3637_v30 = vpack.c.bf16 %v583_v25, %v581_v24  ;;  %s5562_s30 = sld [smem:[#allocation27_spill]]  ;;  %vm2696_vm13 = vcmask 982016   ;;  %s5563_s18 = sld [smem:[#allocation28_spill]] }
  0xbb   : > { %v598_v18 = vrot.slane %v4693_v13, 1  ;;  %v599_v19 = vrot.slane %v4696_v14, 1  ;;  %v601_v28 = vrot.slane %v4715_v23, 1  ;;  %v4728_v29 = vld [vmem:[%s4666_s17 + $0x18] sm:$0xf]  ;;  %v3025_v33 = vld [vmem:[%s5505_s1 + $0x88] sm:$0xff] }
  0xbc   : > { %3632 = vmatpush1.bf16.msk.msra.mxu0 %vm4659_vm2, %v3630_v17  ;;  %v582_v32 = vld [vmem:[%s5505_s1 + $0x30] sm:$0xf]  ;;  %v3027_v34 = vld [vmem:[%s5505_s1 + $0x98] sm:$0xff]  ;;  %v603_v36 = vrot.slane %v4728_v29, 1  ;;  %v3024_v40 = vld [vmem:[%s5505_s1 + $0x80] sm:$0xff]  ;;  %v807_v52 = vrot.slane %v4693_v13, 2 }
  0xbd   : > { %v600_v26 = vsel %vm597_vm3, %v598_v18, %v599_v19  ;;  %3634 = vmatprep.subr.bf16.mxu0 %v3633_v20  ;;  %v602_v35 = vsel %vm597_vm3, %v599_v19, %v601_v28  ;;  %v3640_v37 = vpack.c.bf16 %v582_v32, %v580_v31  ;;  %v3643_v38 = vpack.c.bf16 %v3027_v34, %v3025_v33  ;;  %v3026_v41 = vld [vmem:[%s5505_s1 + $0x90] sm:$0xff]  ;;  %v3029_v42 = vld [vmem:[%s5505_s1 + $0xa8] sm:$0xff]  ;;  %v3031_v43 = vld [vmem:[%s5505_s1 + $0xb8] sm:$0xf]  ;;  %s5566_s23 = sld [smem:[#allocation25_spill]]  ;;  %s3157_s13 = sshll.u32 %s4456_s22, 4 }
  0xbe   : > { %v604_v39 = vsel %vm597_vm3, %v601_v28, %v603_v36  ;;  %v3645_v44 = vpack.c.bf16 %v3026_v41, %v3024_v40  ;;  %v3647_v45 = vpack.c.bf16 %v3031_v43, %v3029_v42  ;;  %v3028_v46 = vld [vmem:[%s5505_s1 + $0xa0] sm:$0xff]  ;;  %v3030_v47 = vld [vmem:[%s5505_s1 + $0xb0] sm:$0xf]  ;;  %v3038_v48 = vld [vmem:[%s5505_s1 + $0xc8] sm:$0xff]  ;;  %v808_v53 = vrot.slane %v4696_v14, 2  ;;  %s5567_s16 = sld [smem:[#allocation29_spill]] }
  0xbf   : > { %3016 = vmatmul.mubr.msk.f32.vlgmr.msra.gmra.mrb[0].mxu0 %vm605_vm4, %v600_v26  ;;  %v3040_v49 = vld [vmem:[%s5505_s1 + $0xd8] sm:$0xff]  ;;  %v3650_v50 = vpack.c.bf16 %v3030_v47, %v3028_v46  ;;  %v3037_v54 = vld [vmem:[%s5505_s1 + $0xc0] sm:$0xff]  ;;  %v3039_v55 = vld [vmem:[%s5505_s1 + $0xd0] sm:$0xff]  ;;  %v810_v60 = vrot.slane %v4715_v23, 2  ;;  %v812_v5 = vrot.slane %v4728_v29, 2  ;;  %v925_v9 = vrot.slane %v4693_v13, 3 }
  0xc0   : > { %689 = vmatprep.mubr.f32.mxu0 %v4350_v0  ;;  %3636 = vmatpush1.bf16.msra.mxu0 %v3635_v27  ;;  %v3653_v51 = vpack.c.bf16 %v3040_v49, %v3038_v48  ;;  %v3042_v56 = vld [vmem:[%s5505_s1 + $0xe8] sm:$0xff]  ;;  %v3044_v57 = vld [vmem:[%s5505_s1 + $0xf8] sm:$0xf]  ;;  %v809_v58 = vsel %vm806_vm5, %v807_v52, %v808_v53  ;;  %v3655_v59 = vpack.c.bf16 %v3039_v55, %v3037_v54  ;;  %v3041_v62 = vld [vmem:[%s5505_s1 + $0xe0] sm:$0xff]  ;;  %v926_v10 = vrot.slane %v4696_v14, 3  ;;  %s5564_s15 = smov %s5563_s18  ;;  %s4354_s22 = smov [#allocation13]  }
  0xc1   : > { %3639 = vmatprep.subr.msk.bf16.mxu0 %vm4659_vm2, %v3637_v30  ;;  %v3657_v61 = vpack.c.bf16 %v3044_v57, %v3042_v56  ;;  %v3043_v63 = vld [vmem:[%s5505_s1 + $0xf0] sm:$0xf]  ;;  %v3051_v2 = vld [vmem:[%s5505_s1 + $0x108] sm:$0xff]  ;;  %v3053_v3 = vld [vmem:[%s5505_s1 + $0x118] sm:$0xff]  ;;  %v811_v4 = vsel %vm806_vm5, %v808_v53, %v810_v60  ;;  %v813_v8 = vsel %vm806_vm5, %v810_v60, %v812_v5  ;;  %v928_v19 = vrot.slane %v4715_v23, 3  ;;  %s4264_s19 = sshll.u32 %s4354_s22, 4  ;;  %s4265_s19 = int_to_ptr.vmem [resolvable:$false] %s4264_s19 }
  0xc2   : > { %v3660_v6 = vpack.c.bf16 %v3043_v63, %v3041_v62  ;;  %v3663_v7 = vpack.c.bf16 %v3053_v3, %v3051_v2  ;;  %v3050_v11 = vld [vmem:[%s5505_s1 + $0x100] sm:$0xff]  ;;  %v3052_v12 = vld [vmem:[%s5505_s1 + $0x110] sm:$0xff]  ;;  %v3055_v15 = vld [vmem:[%s5505_s1 + $0x128] sm:$0xff]  ;;  %v927_v17 = vsel %vm924_vm6, %v925_v9, %v926_v10  ;;  %v930_v25 = vrot.slane %v4728_v29, 3  ;;  %s4266_s11 = scalar_lea.vmem %s4265_s19, 32 }
  0xc3   : > { %3017 = vmatmul.mubr.msk.f32.gmra.mrb[2].mxu0 %vm605_vm4, %v602_v35  ;;  %v3057_v16 = vld [vmem:[%s5505_s1 + $0x138] sm:$0xf]  ;;  %v3665_v18 = vpack.c.bf16 %v3052_v12, %v3050_v11  ;;  %v3054_v21 = vld [vmem:[%s5505_s1 + $0x120] sm:$0xff]  ;;  %v3056_v22 = vld [vmem:[%s5505_s1 + $0x130] sm:$0xf]  ;;  %v929_v24 = vsel %vm924_vm6, %v926_v10, %v928_v19  ;;  %v1042_v28 = vrot.slane %v4693_v13, 4 }
  0xc4   : > { %695 = vmatprep.mubr.f32.mxu0 %v4350_v0  ;;  %3642 = vmatpush1.bf16.msk.msra.mxu0 %vm4659_vm2, %v3640_v37  ;;  %v3667_v20 = vpack.c.bf16 %v3057_v16, %v3055_v15  ;;  %v3670_v26 = vpack.c.bf16 %v3056_v22, %v3054_v21  ;;  %v931_v27 = vsel %vm924_vm6, %v928_v19, %v930_v25  ;;  %v1043_v30 = vrot.slane %v4696_v14, 4  ;;  %v1150_v36 = vld [vmem:[#allocation2] sm:$0x3]  ;;  %v1205_v25 = vld [vmem:[%s5507_s3 + $0x8] sm:$0xf]  ;;  %s5462_s25 = scalar_lea.hbm %s5567_s16, %s3157_s13  ;;  %p5568_p1 = scmp.ne.s32.totalorder %s5566_s23, 0 }
  0xc5   : > { %3644 = vmatprep.subr.bf16.mxu0 %v3643_v38  ;;  %v1045_v32 = vrot.slane %v4715_v23, 4  ;;  %v1047_v1 = vrot.slane %v4728_v29, 4  ;;  %v1204_v22 = vld [vmem:[%s5507_s3] sm:$0xff]  ;;  %vm2858_vm14 = vcmask 73728  }
  0xc6   : > { %v1044_v31 = vsel %vm612_vm0, %v1042_v28, %v1043_v30  ;;  %v3065_v28 = vld [vmem:[%s5507_s3 + $0x10] sm:$0xff] }
  0xc7   : > { %3018 = vmatmul.mubr.msk.f32.gmra.mrb[4].mxu0 %vm605_vm4, %v604_v39  ;;  %v1046_v33 = vsel %vm612_vm0, %v1043_v30, %v1045_v32 }
  0xc8   : > { %778 = vmatprep.mubr.f32.mxu0 %v4350_v0 }
  0xcb   : > { %3021 = vmatmul.mubr.msk.f32.vlgmr.msra.gmra.mrb[0].mxu0 %vm605_vm4, %v4693_v13  ;;  %v1048_v13 = vsel %vm612_vm0, %v1045_v32, %v1047_v1  ;;  %v1383_v32 = vld [vmem:[%s5508_s4 + $0x18] sm:$0xff] }
  0xcc   : > { %784 = vmatprep.mubr.f32.mxu0 %v4350_v0  ;;  %3646 = vmatpush1.bf16.msra.mxu0 %v3645_v44 }
  0xcd   : > { %3649 = vmatprep.subr.msk.bf16.mxu0 %vm4659_vm2, %v3647_v45 }
  0xcf   : > { %3022 = vmatmul.mubr.msk.f32.gmra.mrb[2].mxu0 %vm605_vm4, %v4696_v14  ;;  %v4352_v14 = vmov 0.0|0.0  }
  0xd0   : > { %790 = vmatprep.mubr.f32.mxu0 %v4350_v0  ;;  %3652 = vmatpush1.bf16.msk.msra.mxu0 %vm4659_vm2, %v3650_v50 }
  0xd1   : > { %3654 = vmatprep.subr.bf16.mxu0 %v3653_v51 }
  0xd3   : > { %3023 = vmatmul.mubr.msk.f32.gmra.mrb[4].mxu0 %vm605_vm4, %v4715_v23  ;;  %v1152_v23 = vlaneseq }
  0xd4   : > { %890 = vmatprep.mubr.f32.mxu0 %v4350_v0 }
  0xd5   : > { %v1153_v34 = vshrl.u32 %v1152_v23, 7  ;;  %v1385_v23 = vld [vmem:[%s5508_s4 + $0x28] sm:$0xff] }
  0xd7   : > { %3034 = vmatmul.mubr.msk.f32.vlgmr.msra.gmra.mrb[0].mxu0 %vm605_vm4, %v809_v58  ;;  %v1154_v35 = vsub.s32 0, %v1153_v34  ;;  %v1158_v37 = vsub.s32 1, %v1153_v34 }
  0xd8   : > { %896 = vmatprep.mubr.f32.mxu0 %v4350_v0  ;;  %3656 = vmatpush1.bf16.msra.mxu0 %v3655_v59 }
  0xd9   : > { %3659 = vmatprep.subr.msk.bf16.mxu0 %vm4659_vm2, %v3657_v61  ;;  %v1155_v38 = vrot.slane %v1150_v36, %v1154_v35  ;;  %v1159_v39 = vrot.slane %v1150_v36, %v1158_v37  ;;  %v1386_v35 = vld [vmem:[%s5508_s4 + $0x30] sm:$0xff]  ;;  %v1387_v36 = vld [vmem:[%s5508_s4 + $0x38] sm:$0xff] }
  0xda   : > { %v3691_v37 = vpack.c.bf16 %v1387_v36, %v1386_v35  ;;  %v3093_v36 = vld [vmem:[%s5509_s5 + $0x58] sm:$0xff] }
  0xdb   : > { %3035 = vmatmul.mubr.msk.f32.gmra.mrb[2].mxu0 %vm605_vm4, %v811_v4 }
  0xdc   : > { %902 = vmatprep.mubr.f32.mxu0 %v4350_v0  ;;  %3662 = vmatpush1.bf16.msk.msra.mxu0 %vm4659_vm2, %v3660_v6 }
  0xdd   : > { %3664 = vmatprep.subr.bf16.mxu0 %v3663_v7 }
  0xdf   : > { %3036 = vmatmul.mubr.msk.f32.gmra.mrb[4].mxu0 %vm605_vm4, %v813_v8 }
  0xe0   : > { %1008 = vmatprep.mubr.f32.mxu0 %v4350_v0 }
  0xe3   : > { %3047 = vmatmul.mubr.msk.f32.vlgmr.msra.gmra.mrb[0].mxu0 %vm605_vm4, %v927_v17 }
  0xe4   : > { %1014 = vmatprep.mubr.f32.mxu0 %v4350_v0  ;;  %3666 = vmatpush1.bf16.msra.mxu0 %v3665_v18 }
  0xe5   : > { %3669 = vmatprep.subr.msk.bf16.mxu0 %vm4659_vm2, %v3667_v20 }
  0xe7   : > { %3048 = vmatmul.mubr.msk.f32.gmra.mrb[2].mxu0 %vm605_vm4, %v929_v24 }
  0xe8   : > { %1020 = vmatprep.mubr.f32.mxu0 %v4350_v0  ;;  %3672 = vmatpush1.bf16.msk.msra.mxu0 %vm4659_vm2, %v3670_v26  ;;  %v1380_v26 = vld [vmem:[%s5508_s4] sm:$0xff] }
  0xe9   : > { %3735 = vmatprep.subr.bf16.mxu0 %v4352_v14 }
  0xeb   : > { %3049 = vmatmul.mubr.msk.f32.gmra.mrb[4].mxu0 %vm605_vm4, %v931_v27  ;;  %v1381_v27 = vld [vmem:[%s5508_s4 + $0x8] sm:$0xff] }
  0xec   : > { %1125 = vmatprep.mubr.f32.mxu0 %v4350_v0  ;;  %v3682_v30 = vpack.c.bf16 %v1381_v27, %v1380_v26  ;;  %v3085_v26 = vld [vmem:[%s5508_s4 + $0x100] sm:$0xff]  ;;  %v3086_v27 = vld [vmem:[%s5508_s4 + $0x108] sm:$0xff] }
  0xef   : > { %3060 = vmatmul.mubr.msk.f32.vlgmr.msra.gmra.mrb[0].mxu0 %vm605_vm4, %v1044_v31  ;;  %v1382_v31 = vld [vmem:[%s5508_s4 + $0x10] sm:$0xff] }
  0xf0   : > { %1131 = vmatprep.mubr.f32.mxu0 %v4350_v0  ;;  %v3685_v1 = vpack.c.bf16 %v1383_v32, %v1382_v31  ;;  %v3088_v31 = vld [vmem:[%s5508_s4 + $0x118] sm:$0xff] }
  0xf3   : > { %3061 = vmatmul.mubr.msk.f32.gmra.mrb[2].mxu0 %vm605_vm4, %v1046_v33  ;;  %v3066_v33 = vld [vmem:[%s5507_s3 + $0x18] sm:$0xf] }
  0xf4   : > { %1137 = vmatprep.mubr.f32.mxu0 %v4350_v0 }
  0xf7   : > { %3062 = vmatmul.mubr.msk.f32.gmra.mrb[4].mxu0 %vm605_vm4, %v1048_v13  ;;  %v1384_v13 = vld [vmem:[%s5508_s4 + $0x20] sm:$0xff] }
  0xf8   : > { %v3688_v34 = vpack.c.bf16 %v1385_v23, %v1384_v13  ;;  %v3102_v13 = vld [vmem:[%s5509_s5 + $0x90] sm:$0xff]  ;;  %3328 = vmatprep.mubr.msk.f32.mxu0 %vm4353_vm9, %v4350_v0 }
 0x1c2   : > { %v1127_v40 = vpop.f32.mrb[0].mxu0 }
 0x1c3   : > { %v1162_v29 = vadd.f32 %v1155_v38, %v1127_v40  ;;  %v1129_v41 = vpop.f32.mrb[1].mxu0 }
 0x1c4   : > { %v1163_v42 = vadd.f32 %v1159_v39, %v1129_v41  ;;  %v1391_v41 = vld [vmem:[%s5508_s4 + $0x58] sm:$0xff] }
 0x1c5   : > { %v1168_v43 = vsub.f32 0.0, %v1162_v29  ;;  %v1390_v29 = vld [vmem:[%s5508_s4 + $0x50] sm:$0xff] }
 0x1c6   : > { %v1169_v44 = vsub.f32 0.0, %v1163_v42  ;;  %v1133_v45 = vpop.f32.mrb[2].mxu0  ;;  %v3697_v42 = vpack.c.bf16 %v1391_v41, %v1390_v29  ;;  %v3095_v41 = vld [vmem:[%s5509_s5 + $0x68] sm:$0xff] }
 0x1c7   : > { %v1174_v46 = vmul.f32 1.442695, %v1168_v43  ;;  %v1164_v47 = vadd.f32 %v1155_v38, %v1133_v45  ;;  %v1135_v48 = vpop.f32.mrb[3].mxu0  ;;  %v1392_v43 = vld [vmem:[%s5508_s4 + $0x60] sm:$0xff] }
 0x1c8   : > { %v1176_v49 = vmul.f32 1.442695, %v1169_v44  ;;  %v1165_v50 = vadd.f32 %v1159_v39, %v1135_v48  ;;  %v1393_v44 = vld [vmem:[%s5508_s4 + $0x68] sm:$0xff] }
 0x1c9   : > { %4056 = vpow2.f32 %v1174_v46  ;;  %v1170_v51 = vsub.f32 0.0, %v1164_v47  ;;  %v3700_v45 = vpack.c.bf16 %v1393_v44, %v1392_v43  ;;  %v1394_v46 = vld [vmem:[%s5508_s4 + $0x70] sm:$0xff]  ;;  %v1395_v47 = vld [vmem:[%s5508_s4 + $0x78] sm:$0xff] }
 0x1ca   : > { %4058 = vpow2.f32 %v1176_v49  ;;  %v1171_v52 = vsub.f32 0.0, %v1165_v50  ;;  %v1139_v53 = vpop.f32.mrb[4].mxu0  ;;  %v3703_v48 = vpack.c.bf16 %v1395_v47, %v1394_v46  ;;  %v1396_v49 = vld [vmem:[%s5508_s4 + $0x80] sm:$0xff]  ;;  %v1397_v50 = vld [vmem:[%s5508_s4 + $0x88] sm:$0xff]  ;;  %v3106_v43 = vld [vmem:[%s5509_s5 + $0xb0] sm:$0xff] }
 0x1cb   : > { %v1178_v54 = vmul.f32 1.442695, %v1170_v51  ;;  %v1166_v55 = vadd.f32 %v1155_v38, %v1139_v53  ;;  %v1141_v56 = vpop.f32.mrb[5].mxu0  ;;  %v1388_v38 = vld [vmem:[%s5508_s4 + $0x40] sm:$0xff]  ;;  %v3706_v51 = vpack.c.bf16 %v1397_v50, %v1396_v49  ;;  %v3097_v46 = vld [vmem:[%s5509_s5 + $0x78] sm:$0xff]  ;;  %v3109_v50 = vld [vmem:[%s5509_s5 + $0xc8] sm:$0xff] }
 0x1cc   : > { %v1180_v57 = vmul.f32 1.442695, %v1171_v52  ;;  %v1167_v58 = vadd.f32 %v1159_v39, %v1141_v56  ;;  %v1389_v39 = vld [vmem:[%s5508_s4 + $0x48] sm:$0xff]  ;;  %v3071_v56 = vld [vmem:[%s5508_s4 + $0x90] sm:$0xff]  ;;  %v3098_v47 = vld [vmem:[%s5509_s5 + $0x80] sm:$0xff] }
 0x1cd   : > { %4060 = vpow2.f32 %v1178_v54  ;;  %v1172_v59 = vsub.f32 0.0, %v1166_v55  ;;  %v3694_v40 = vpack.c.bf16 %v1389_v39, %v1388_v38  ;;  %v3104_v38 = vld [vmem:[%s5509_s5 + $0xa0] sm:$0xff] }
 0x1ce   : > { %4062 = vpow2.f32 %v1180_v57  ;;  %v1173_v60 = vsub.f32 0.0, %v1167_v58  ;;  %v3072_v57 = vld [vmem:[%s5508_s4 + $0x98] sm:$0xff]  ;;  %v3108_v49 = vld [vmem:[%s5509_s5 + $0xc0] sm:$0xff] }
 0x1cf   : > { %v1182_v61 = vmul.f32 1.442695, %v1172_v59 }
 0x1d0   : > { %v1184_v62 = vmul.f32 1.442695, %v1173_v60 }
 0x1d1   : > { %4064 = vpow2.f32 %v1182_v61 }
 0x1d2   : > { %4066 = vpow2.f32 %v1184_v62  ;;  %v3709_v62 = vpack.c.bf16 %v3072_v57, %v3071_v56 }
 0x1d3   : > { %v4057_v63 = vpop.eup %4056 }
 0x1d4   : > { %v4059_v2 = vpop.eup %4058  ;;  %v1186_v3 = vadd.f32 1.0, %v4057_v63  ;;  %v3073_v63 = vld [vmem:[%s5508_s4 + $0xa0] sm:$0xff] }
 0x1d5   : > { %v1187_v4 = vadd.f32 1.0, %v4059_v2  ;;  %v3074_v2 = vld [vmem:[%s5508_s4 + $0xa8] sm:$0xff] }
 0x1d6   : > { %4068 = vrcp.f32 %v1186_v3 }
 0x1d7   : > { %v4061_v5 = vpop.eup %4060  ;;  %4070 = vrcp.f32 %v1187_v4 }
 0x1d8   : > { %v4063_v6 = vpop.eup %4062  ;;  %v1188_v7 = vadd.f32 1.0, %v4061_v5 }
 0x1d9   : > { %v1189_v8 = vadd.f32 1.0, %v4063_v6 }
 0x1da   : > { %4072 = vrcp.f32 %v1188_v7  ;;  %v3712_v7 = vpack.c.bf16 %v3074_v2, %v3073_v63 }
 0x1db   : > { %v4065_v9 = vpop.eup %4064  ;;  %4074 = vrcp.f32 %v1189_v8  ;;  %v3075_v8 = vld [vmem:[%s5508_s4 + $0xb0] sm:$0xff] }
 0x1dc   : > { %v4067_v10 = vpop.eup %4066  ;;  %v1190_v12 = vadd.f32 1.0, %v4065_v9  ;;  %v3076_v9 = vld [vmem:[%s5508_s4 + $0xb8] sm:$0xff] }
 0x1dd   : > { %v1191_v11 = vadd.f32 1.0, %v4067_v10  ;;  %v3715_v10 = vpack.c.bf16 %v3076_v9, %v3075_v8 }
 0x1df   : > { %4076 = vrcp.f32 %v1191_v11  ;;  %v3077_v11 = vld [vmem:[%s5508_s4 + $0xc0] sm:$0xff] }
 0x1e0   : > { %v4069_v15 = vpop.eup %4068  ;;  %4078 = vrcp.f32 %v1190_v12  ;;  %v3078_v12 = vld [vmem:[%s5508_s4 + $0xc8] sm:$0xff] }
 0x1e1   : > { %v4071_v16 = vpop.eup %4070 }
 0x1e4   : > { %v4073_v17 = vpop.eup %4072 }
 0x1e5   : > { %v4075_v18 = vpop.eup %4074  ;;  %v3675_v19 = vpack.c.bf16 %v4073_v17, %v4069_v15  ;;  %v3718_v15 = vpack.c.bf16 %v3078_v12, %v3077_v11  ;;  %v3080_v17 = vld [vmem:[%s5508_s4 + $0xd8] sm:$0xff]  ;;  %v1588_v11 = vld [vmem:[%s5509_s5] sm:$0xff]  ;;  %v1589_v12 = vld [vmem:[%s5509_s5 + $0x8] sm:$0xff] }
 0x1e6   : > { %v3673_v20 = vpack.c.bf16 %v4075_v18, %v4071_v16  ;;  %v3079_v16 = vld [vmem:[%s5508_s4 + $0xd0] sm:$0xff] }
 0x1e7   : > { %v3721_v18 = vpack.c.bf16 %v3080_v17, %v3079_v16  ;;  %v3123_v16 = vld [vmem:[%s5509_s5 + $0x128] sm:$0xff] }
 0x1e8   : > { %3674 = vmatprep.subr.bf16.mxu1 %v3673_v20 }
 0x1e9   : > { %v4077_v21 = vpop.eup %4076  ;;  %3676 = vmatpush1.bf16.msra.mxu1 %v3675_v19 }
 0x1ea   : > { %1217 = vmatprep.subr.mxu1 %v4077_v21  ;;  %v4079_v24 = vpop.eup %4078 }
 0x1ed   : > { %1218 = vmatpush1.msra.mxu1 %v4079_v24 }
 0x1ee   : > { %3063 = vmatmul.mubr.msk.f32.vlgmr.msra.gmra.mrb[0].mxu1 %vm1206_vm7, %v1204_v22  ;;  %3678 = vmatprep.subr.bf16.mxu1 %v3673_v20  ;;  %v3082_v20 = vld [vmem:[%s5508_s4 + $0xe8] sm:$0xff]  ;;  %v3083_v22 = vld [vmem:[%s5508_s4 + $0xf0] sm:$0xff] }
 0x1ef   : > { %3680 = vmatpush1.bf16.msra.mxu1 %v3675_v19  ;;  %1283 = vmatprep.mubr.f32.mxu1 %v4350_v0  ;;  %v3081_v19 = vld [vmem:[%s5508_s4 + $0xe0] sm:$0xff] }
 0x1f0   : > { %1303 = vmatprep.subr.mxu1 %v4077_v21  ;;  %v3724_v21 = vpack.c.bf16 %v3082_v20, %v3081_v19 }
 0x1f2   : > { %3064 = vmatmul.mubr.msk.f32.gmra.mrb[2].mxu1 %vm1206_vm7, %v1205_v25 }
 0x1f3   : > { %1304 = vmatpush1.msra.mxu1 %v4079_v24  ;;  %1363 = vmatprep.mubr.f32.mxu1 %v4350_v0  ;;  %v3084_v24 = vld [vmem:[%s5508_s4 + $0xf8] sm:$0xff] }
 0x1f4   : > { %3681 = vmatprep.subr.bf16.mxu1 %v4352_v14  ;;  %v3727_v25 = vpack.c.bf16 %v3084_v24, %v3083_v22 }
 0x1f6   : > { %3067 = vmatmul.mubr.msk.f32.vlgmr.msra.gmra.mrb[4].mxu1 %vm1206_vm7, %v3065_v28  ;;  %v3730_v28 = vpack.c.bf16 %v3086_v27, %v3085_v26 }
 0x1f7   : > { %1369 = vmatprep.mubr.f32.mxu1 %v4350_v0  ;;  %3683 = vmatpush1.bf16.msra.mxu1 %v3682_v30  ;;  %v3087_v30 = vld [vmem:[%s5508_s4 + $0x110] sm:$0xff] }
 0x1f8   : > { %3684 = vmatprep.subr.bf16.mxu1 %v4352_v14  ;;  %v3733_v32 = vpack.c.bf16 %v3088_v31, %v3087_v30 }
 0x1fa   : > { %3068 = vmatmul.mubr.msk.f32.gmra.mrb[6].mxu1 %vm1206_vm7, %v3066_v33  ;;  %v3091_v33 = vld [vmem:[%s5509_s5 + $0x48] sm:$0xff] }
 0x1fb   : > { %3686 = vmatpush1.bf16.msra.mxu1 %v3685_v1  ;;  %v3092_v1 = vld [vmem:[%s5509_s5 + $0x50] sm:$0xff] }
 0x1fc   : > { %3687 = vmatprep.subr.bf16.mxu1 %v4352_v14  ;;  %v3736_v23 = vpack.c.bf16 %v3092_v1, %v3091_v33  ;;  %v3124_v33 = vld [vmem:[%s5509_s5 + $0x130] sm:$0xff]  ;;  %v3125_v1 = vld [vmem:[%s5509_s5 + $0x138] sm:$0xff] }
 0x1fe   : > { %3737 = vmatpush3.bf16.msra.mxu0 %v3736_v23 }
 0x1ff   : > { %3689 = vmatpush1.bf16.msra.mxu1 %v3688_v34  ;;  %v3103_v34 = vld [vmem:[%s5509_s5 + $0x98] sm:$0xff]  ;;  %3738 = vmatprep.subr.bf16.mxu0 %v4352_v14 }
 0x200   : > { %3690 = vmatprep.subr.bf16.mxu1 %v4352_v14  ;;  %v3760_v35 = vpack.c.bf16 %v3103_v34, %v3102_v13 }
 0x203   : > { %3692 = vmatpush1.bf16.msra.mxu1 %v3691_v37  ;;  %v3094_v37 = vld [vmem:[%s5509_s5 + $0x60] sm:$0xff] }
 0x204   : > { %3693 = vmatprep.subr.bf16.mxu1 %v4352_v14  ;;  %v3739_v39 = vpack.c.bf16 %v3094_v37, %v3093_v36  ;;  %v3787_v37 = vpack.c.bf16 %v3125_v1, %v3124_v33  ;;  %v3138_v33 = vld [vmem:[%s5512_s8 + $0x98] sm:$0xff] }
 0x206   : > { %3740 = vmatpush3.bf16.msra.mxu0 %v3739_v39  ;;  %v1593_v39 = vld [vmem:[%s5509_s5 + $0x28] sm:$0xff] }
 0x207   : > { %3695 = vmatpush1.bf16.msra.mxu1 %v3694_v40  ;;  %v3105_v40 = vld [vmem:[%s5509_s5 + $0xa8] sm:$0xff]  ;;  %3741 = vmatprep.subr.bf16.mxu0 %v4352_v14 }
 0x208   : > { %3696 = vmatprep.subr.bf16.mxu1 %v4352_v14  ;;  %v3763_v29 = vpack.c.bf16 %v3105_v40, %v3104_v38  ;;  %v1592_v38 = vld [vmem:[%s5509_s5 + $0x20] sm:$0xff] }
 0x209   : > { %v3126_v40 = vld [vmem:[%s5509_s5 + $0x140] sm:$0xff] }
 0x20b   : > { %3698 = vmatpush1.bf16.msra.mxu1 %v3697_v42  ;;  %v3096_v42 = vld [vmem:[%s5509_s5 + $0x70] sm:$0xff] }
 0x20c   : > { %3699 = vmatprep.subr.bf16.mxu1 %v4352_v14  ;;  %v3742_v44 = vpack.c.bf16 %v3096_v42, %v3095_v41  ;;  %v3754_v41 = vpack.c.bf16 %v1593_v39, %v1592_v38  ;;  %v2180_v39 = vld [vmem:[%s5512_s8 + $0x30] sm:$0xff] }
 0x20e   : > { %3743 = vmatpush3.bf16.msra.mxu0 %v3742_v44  ;;  %v1595_v44 = vld [vmem:[%s5509_s5 + $0x38] sm:$0xff] }
 0x20f   : > { %3701 = vmatpush1.bf16.msra.mxu1 %v3700_v45  ;;  %v3107_v45 = vld [vmem:[%s5509_s5 + $0xb8] sm:$0xff]  ;;  %3744 = vmatprep.subr.bf16.mxu0 %v4352_v14 }
 0x210   : > { %3702 = vmatprep.subr.bf16.mxu1 %v4352_v14 }
 0x213   : > { %3704 = vmatpush1.bf16.msra.mxu1 %v3703_v48  ;;  %v3766_v48 = vpack.c.bf16 %v3107_v45, %v3106_v43  ;;  %v1594_v43 = vld [vmem:[%s5509_s5 + $0x30] sm:$0xff] }
 0x214   : > { %3705 = vmatprep.subr.bf16.mxu1 %v4352_v14  ;;  %v3128_v45 = vld [vmem:[%s5509_s5 + $0x150] sm:$0xff] }
 0x217   : > { %3707 = vmatpush1.bf16.msra.mxu1 %v3706_v51  ;;  %v3745_v51 = vpack.c.bf16 %v3098_v47, %v3097_v46  ;;  %v3129_v46 = vld [vmem:[%s5509_s5 + $0x158] sm:$0xff]  ;;  %v3757_v47 = vpack.c.bf16 %v1595_v44, %v1594_v43  ;;  %v2182_v44 = vld [vmem:[%s5512_s8 + $0x40] sm:$0xff] }
 0x218   : > { %3708 = vmatprep.subr.bf16.mxu1 %v4352_v14 }
 0x219   : > { %3746 = vmatpush3.bf16.msra.mxu0 %v3745_v51  ;;  %v1596_v51 = vld [vmem:[%s5509_s5 + $0x40] sm:$0xff] }
 0x21a   : > { %3326 = vmatprep.subr.mxu0 %v4350_v0 }
 0x2c1   : > { %v1279_v52 = vpop.f32.mrb[0].mxu1 }
 0x2c2   : > { %v1281_v53 = vpop.f32.mrb[1].mxu1 }
 0x2c5   : > { %v1285_v54 = vpop.f32.mrb[2].mxu1 }
 0x2c6   : > { %v1287_v55 = vpop.f32.mrb[3].mxu1 }
 0x2c9   : > { %v1365_v58 = vpop.f32.mrb[4].mxu1 }
 0x2ca   : > { %v1376_v59 = vmax.f32 %v1279_v52, %v1365_v58  ;;  %v1367_v60 = vpop.f32.mrb[5].mxu1  ;;  %v3769_v52 = vpack.c.bf16 %v3109_v50, %v3108_v49  ;;  %v3112_v49 = vld [vmem:[%s5509_s5 + $0xd8] sm:$0xff]  ;;  %v3113_v50 = vld [vmem:[%s5509_s5 + $0xe0] sm:$0xff] }
 0x2cb   : > { %v1377_v61 = vmax.f32 %v1281_v53, %v1367_v60  ;;  %v3099_v53 = vld [vmem:[%s5509_s5 + $0x88] sm:$0xff] }
 0x2cc   : > { %3327 = vmatpush3.msra.mxu0 %v3099_v53  ;;  %v3772_v53 = vpack.c.bf16 %v3113_v50, %v3112_v49  ;;  %v2184_v50 = vld [vmem:[%s5512_s8 + $0x50] sm:$0xff] }
 0x2cd   : > { %v1371_v3 = vpop.f32.mrb[6].mxu1  ;;  %3069 = vmatprep.mubr.msk.f32.mxu1 %vm1398_vm8, %v1377_v61  ;;  %3747 = vmatprep.subr.bf16.mxu0 %v4352_v14 }
 0x2ce   : > { %v1378_v4 = vmax.f32 %v1285_v54, %v1371_v3  ;;  %v1373_v5 = vpop.f32.mrb[7].mxu1  ;;  %1470 = vmatmul.mubr.f32.vlgmr.msra.gmra.mrb[8].mxu1 %v1376_v59  ;;  %v3110_v54 = vld [vmem:[%s5509_s5 + $0xd0] sm:$0xff] }
 0x2cf   : > { %v1379_v6 = vmax.f32 %v1287_v55, %v1373_v5  ;;  %3710 = vmatpush1.bf16.msra.mxu1 %v3709_v62 }
 0x2d0   : > { %3711 = vmatprep.subr.bf16.mxu1 %v4352_v14 }
 0x2d1   : > { %3070 = vmatprep.mubr.msk.f32.mxu1 %vm1398_vm8, %v1379_v6 }
 0x2d2   : > { %1475 = vmatmul.mubr.f32.gmra.mrb[10].mxu1 %v1378_v4 }
 0x2d3   : > { %3713 = vmatpush1.bf16.msra.mxu1 %v3712_v7  ;;  %3089 = vmatprep.mubr.msk.f32.mxu1 %vm1398_vm8, %v1377_v61 }
 0x2d4   : > { %3714 = vmatprep.subr.bf16.mxu1 %v4352_v14 }
 0x2d7   : > { %3716 = vmatpush1.bf16.msra.mxu1 %v3715_v10 }
 0x2d8   : > { %3717 = vmatprep.subr.bf16.mxu1 %v4352_v14 }
 0x2db   : > { %3719 = vmatpush1.bf16.msra.mxu1 %v3718_v15  ;;  %v3122_v15 = vld [vmem:[%s5509_s5 + $0x120] sm:$0xff] }
 0x2dc   : > { %3720 = vmatprep.subr.bf16.mxu1 %v4352_v14  ;;  %v3784_v19 = vpack.c.bf16 %v3123_v16, %v3122_v15 }
 0x2df   : > { %3722 = vmatpush1.bf16.msra.mxu1 %v3721_v18  ;;  %v3748_v18 = vpack.c.bf16 %v1589_v12, %v1588_v11 }
 0x2e0   : > { %3723 = vmatprep.subr.bf16.mxu1 %v4352_v14 }
 0x2e3   : > { %3725 = vmatpush1.bf16.msra.mxu1 %v3724_v21 }
 0x2e4   : > { %3726 = vmatprep.subr.bf16.mxu1 %v4352_v14 }
 0x2e7   : > { %3728 = vmatpush1.bf16.msra.mxu1 %v3727_v25 }
 0x2e8   : > { %3729 = vmatprep.subr.bf16.mxu1 %v4352_v14 }
 0x2eb   : > { %3731 = vmatpush1.bf16.msra.mxu1 %v3730_v28  ;;  %v1590_v28 = vld [vmem:[%s5509_s5 + $0x10] sm:$0xff] }
 0x2ec   : > { %3732 = vmatprep.subr.bf16.mxu1 %v4352_v14 }
 0x2ef   : > { %3734 = vmatpush1.bf16.msra.mxu1 %v3733_v32  ;;  %v1591_v32 = vld [vmem:[%s5509_s5 + $0x18] sm:$0xff] }
 0x2f0   : > { %3759 = vmatprep.subr.bf16.mxu1 %v4352_v14  ;;  %v3751_v36 = vpack.c.bf16 %v1591_v32, %v1590_v28  ;;  %v3137_v32 = vld [vmem:[%s5512_s8 + $0x90] sm:$0xff] }
 0x2f2   : > { %1564 = vmatmul.mubr.f32.vlgmr.msra.gmra.mrb[12].mxu1 %v1376_v59 }
 0x2f3   : > { %3090 = vmatprep.mubr.msk.f32.mxu1 %vm1398_vm8, %v1379_v6  ;;  %3761 = vmatpush3.bf16.msra.mxu1 %v3760_v35 }
 0x2f4   : > { %3762 = vmatprep.subr.bf16.mxu1 %v4352_v14 }
 0x2f6   : > { %1569 = vmatmul.mubr.f32.gmra.mrb[14].mxu1 %v1378_v4 }
 0x2f7   : > { %3764 = vmatpush3.bf16.msra.mxu1 %v3763_v29  ;;  %3370 = vmatprep.mubr.msk.f32.mxu1 %vm4353_vm9, %v4350_v0  ;;  %v3127_v29 = vld [vmem:[%s5509_s5 + $0x148] sm:$0xff] }
 0x2f8   : > { %3765 = vmatprep.subr.bf16.mxu1 %v4352_v14  ;;  %v3790_v42 = vpack.c.bf16 %v3127_v29, %v3126_v40  ;;  %v2181_v40 = vld [vmem:[%s5512_s8 + $0x38] sm:$0xff]  ;;  %v3141_v29 = vld [vmem:[%s5512_s8 + $0xb0] sm:$0xff] }
 0x2fb   : > { %3767 = vmatpush3.bf16.msra.mxu1 %v3766_v48  ;;  %v3793_v48 = vpack.c.bf16 %v3129_v46, %v3128_v45  ;;  %v2183_v45 = vld [vmem:[%s5512_s8 + $0x48] sm:$0xff]  ;;  %v3143_v46 = vld [vmem:[%s5512_s8 + $0xc0] sm:$0xff] }
 0x2fc   : > { %3768 = vmatprep.subr.bf16.mxu1 %v4352_v14 }
 0x2ff   : > { %3770 = vmatpush3.bf16.msra.mxu1 %v3769_v52  ;;  %v3130_v52 = vld [vmem:[%s5509_s5 + $0x160] sm:$0xff] }
 0x300   : > { %3368 = vmatprep.subr.mxu1 %v4350_v0 }
 0x303   : > { %3369 = vmatpush3.msra.mxu1 %v3110_v54  ;;  %v3114_v54 = vld [vmem:[%s5509_s5 + $0xe8] sm:$0xff] }
 0x304   : > { %3783 = vmatprep.subr.bf16.mxu1 %v4352_v14 }
 0x3a1   : > { %v1471_v55 = vpop.f32.mrb[8].mxu1 }
 0x3a2   : > { %v1473_v56 = vpop.f32.mrb[9].mxu1 }
 0x3a5   : > { %v1476_v57 = vpop.f32.mrb[10].mxu1 }
 0x3a6   : > { %v1478_v58 = vpop.f32.mrb[11].mxu1 }
 0x3a7   : > { %v3117_v58 = vld [vmem:[%s5509_s5 + $0x100] sm:$0xff] }
 0x3c5   : > { %v1565_v59 = vpop.f32.mrb[12].mxu1 }
 0x3c6   : > { %v1574_v60 = vmax.f32 %v1471_v55, %v1565_v59  ;;  %v1567_v61 = vpop.f32.mrb[13].mxu1  ;;  %v3115_v55 = vld [vmem:[%s5509_s5 + $0xf0] sm:$0xff] }
 0x3c7   : > { %v3775_v56 = vpack.c.bf16 %v3115_v55, %v3114_v54  ;;  %v3119_v61 = vld [vmem:[%s5509_s5 + $0x110] sm:$0xff] }
 0x3c8   : > { %v1576_v62 = vsub.f32 0.0, %v1574_v60  ;;  %v3118_v60 = vld [vmem:[%s5509_s5 + $0x108] sm:$0xff] }
 0x3c9   : > { %v1570_v63 = vpop.f32.mrb[14].mxu1 }
 0x3ca   : > { %v1578_v2 = vmul.f32 1.442695, %v1576_v62  ;;  %v1575_v3 = vmax.f32 %v1476_v57, %v1570_v63  ;;  %v1572_v4 = vpop.f32.mrb[15].mxu1  ;;  %v3116_v57 = vld [vmem:[%s5509_s5 + $0xf8] sm:$0xff]  ;;  %v3781_v62 = vpack.c.bf16 %v3119_v61, %v3118_v60 }
 0x3cb   : > { %v3778_v59 = vpack.c.bf16 %v3117_v58, %v3116_v57  ;;  %v3120_v63 = vld [vmem:[%s5509_s5 + $0x118] sm:$0xff]  ;;  %v2187_v57 = vld [vmem:[%s5512_s8 + $0x68] sm:$0xff]  ;;  %v3147_v58 = vld [vmem:[%s5512_s8 + $0xe0] sm:$0xff] }
 0x3cc   : > { %4080 = vpow2.f32 %v1578_v2  ;;  %v1577_v5 = vsub.f32 0.0, %v1575_v3 }
 0x3ce   : > { %v1580_v6 = vmul.f32 1.442695, %v1577_v5 }
 0x3d0   : > { %4082 = vpow2.f32 %v1580_v6 }
 0x3d6   : > { %v4081_v7 = vpop.eup %4080 }
 0x3d7   : > { %v1582_v8 = vadd.f32 1.0, %v4081_v7 }
 0x3d9   : > { %4084 = vrcp.f32 %v1582_v8 }
 0x3da   : > { %v4083_v9 = vpop.eup %4082 }
 0x3db   : > { %v1583_v10 = vadd.f32 1.0, %v4083_v9 }
 0x3dd   : > { %4086 = vrcp.f32 %v1583_v10 }
 0x3e3   : > { %v5111_v17 = vpop.eup %4084 }
 0x3e4   : > { %v1609_v21 = vrot.slane %v5111_v17, 1  ;;  %v1767_v22 = vrot.slane %v5111_v17, 2  ;;  %v1939_v24 = vrot.slane %v5111_v17, 4  ;;  %v1853_v25 = vrot.slane %v5111_v17, 3 }
 0x3e7   : > { %v4087_v20 = vpop.eup %4086 }
 0x3e8   : > { %v1610_v26 = vrot.slane %v4087_v20, 1  ;;  %v1768_v27 = vrot.slane %v4087_v20, 2  ;;  %v1940_v30 = vrot.slane %v4087_v20, 4  ;;  %v1854_v31 = vrot.slane %v4087_v20, 3  ;;  %v2175_v20 = vld [vmem:[%s5512_s8 + $0x8] sm:$0xff] }
 0x3ea   : > { %v1611_v13 = vsel %vm597_vm3, %v1609_v21, %v1610_v26  ;;  %v1769_v23 = vsel %vm806_vm5, %v1767_v22, %v1768_v27  ;;  %v1941_v34 = vsel %vm612_vm0, %v1939_v24, %v1940_v30  ;;  %v5133_v35 = vsel %vm924_vm6, %v1853_v25, %v1854_v31  ;;  %v3135_v21 = vld [vmem:[%s5512_s8 + $0x80] sm:$0xff]  ;;  %v3136_v22 = vld [vmem:[%s5512_s8 + $0x88] sm:$0xff]  ;;  %v2176_v30 = vld [vmem:[%s5512_s8 + $0x10] sm:$0xff] }
 0x3eb   : > { %3329 = vmatmul.mubr.msk.f32.vlgmr.msra.gmra.mrb[6].mxu0 %vm1612_vm10, %v1611_v13  ;;  %3371 = vmatmul.mubr.msk.f32.vlgmr.msra.gmra.mrb[16].mxu1 %vm1612_vm10, %v1769_v23  ;;  %v2023_v25 = vld [vmem:[#allocation5] sm:$0xf]  ;;  %v2099_v26 = vld [vmem:[#allocation5 + $0x4] sm:$0xf]  ;;  %v3820_v28 = vpack.c.bf16 %v3136_v22, %v3135_v21  ;;  %v2177_v31 = vld [vmem:[%s5512_s8 + $0x18] sm:$0xff]  ;;  %v3823_v13 = vpack.c.bf16 %v3138_v33, %v3137_v32 }
 0x3ec   : > { %3749 = vmatpush3.bf16.msra.mxu0 %v3748_v18  ;;  %3785 = vmatpush3.bf16.msra.mxu1 %v3784_v19  ;;  %v2174_v18 = vld [vmem:[%s5512_s8] sm:$0xff]  ;;  %v3799_v1 = vpack.c.bf16 %v2177_v31, %v2176_v30  ;;  %v2362_v30 = vld [vmem:[#allocation7 + $0x68] sm:$0xff] }
 0x3ed   : > { %3750 = vmatprep.subr.bf16.mxu0 %v4352_v14  ;;  %3786 = vmatprep.subr.bf16.mxu1 %v4352_v14  ;;  %v3796_v27 = vpack.c.bf16 %v2175_v20, %v2174_v18  ;;  %v2178_v23 = vld [vmem:[%s5512_s8 + $0x20] sm:$0xff] }
 0x3ee   : > { %3349 = vmatprep.mubr.msk.f32.mxu0 %vm4353_vm9, %v4350_v0  ;;  %3412 = vmatprep.mubr.msk.f32.mxu1 %vm4353_vm9, %v4350_v0  ;;  %v2351_v20 = vld [vmem:[#allocation7 + $0x18] sm:$0xff]  ;;  %v2359_v21 = vld [vmem:[#allocation7 + $0x50] sm:$0xff] }
 0x3ef   : > { %v2360_v22 = vld [vmem:[#allocation7 + $0x58] sm:$0xff]  ;;  %v2354_v33 = vld [vmem:[#allocation7 + $0x30] sm:$0xff] }
 0x3f0   : > { %3752 = vmatpush3.bf16.msra.mxu0 %v3751_v36  ;;  %3788 = vmatpush3.bf16.msra.mxu1 %v3787_v37  ;;  %v3140_v36 = vld [vmem:[%s5512_s8 + $0xa8] sm:$0xff] }
 0x3f1   : > { %3753 = vmatprep.subr.bf16.mxu0 %v4352_v14  ;;  %3789 = vmatprep.subr.bf16.mxu1 %v4352_v14 }
 0x3f4   : > { %3755 = vmatpush3.bf16.msra.mxu0 %v3754_v41  ;;  %3791 = vmatpush3.bf16.msra.mxu1 %v3790_v42  ;;  %v3142_v41 = vld [vmem:[%s5512_s8 + $0xb8] sm:$0xff]  ;;  %v3805_v42 = vpack.c.bf16 %v2181_v40, %v2180_v39 }
 0x3f5   : > { %3756 = vmatprep.subr.bf16.mxu0 %v4352_v14  ;;  %3792 = vmatprep.subr.bf16.mxu1 %v4352_v14  ;;  %v3829_v43 = vpack.c.bf16 %v3142_v41, %v3141_v29  ;;  %v2514_v39 = vld [vmem:[#allocation7 + $0x88] sm:$0xff] }
 0x3f8   : > { %3758 = vmatpush3.bf16.msra.mxu0 %v3757_v47  ;;  %3794 = vmatpush3.bf16.msra.mxu1 %v3793_v48  ;;  %v3144_v47 = vld [vmem:[%s5512_s8 + $0xc8] sm:$0xff]  ;;  %v3808_v48 = vpack.c.bf16 %v2183_v45, %v2182_v44  ;;  %v2598_v45 = vld [vmem:[#allocation7 + $0xd0] sm:$0xff] }
 0x3f9   : > { %3347 = vmatprep.subr.mxu0 %v4350_v0  ;;  %3410 = vmatprep.subr.mxu1 %v4350_v0  ;;  %v3832_v49 = vpack.c.bf16 %v3144_v47, %v3143_v46  ;;  %v2599_v46 = vld [vmem:[#allocation7 + $0xd8] sm:$0xff] }
 0x3fc   : > { %3348 = vmatpush3.msra.mxu0 %v1596_v51  ;;  %3411 = vmatpush3.msra.mxu1 %v3130_v52  ;;  %v2185_v51 = vld [vmem:[%s5512_s8 + $0x58] sm:$0xff]  ;;  %v3145_v52 = vld [vmem:[%s5512_s8 + $0xd0] sm:$0xff] }
 0x3fd   : > { %3350 = vmatmul.mubr.msk.f32.vlgmr.msra.gmra.mrb[8].mxu0 %vm1612_vm10, %v5111_v17  ;;  %3771 = vmatprep.subr.bf16.mxu0 %v4352_v14  ;;  %v3132_v17 = vld [vmem:[%s5510_s6] ss:$0 sm:$0xff]  ;;  %v3811_v54 = vpack.c.bf16 %v2185_v51, %v2184_v50  ;;  %v2516_v50 = vld [vmem:[#allocation7 + $0x98] sm:$0xff]  ;;  %v3883_v51 = vpack.c.bf16 %v2599_v46, %v2598_v45 }
 0x3fe   : > { %3413 = vmatmul.mubr.msk.f32.vlgmr.msra.gmra.mrb[18].mxu1 %vm1612_vm10, %v1941_v34  ;;  %3773 = vmatpush3.bf16.msra.mxu0 %v3772_v53  ;;  %v2179_v34 = vld [vmem:[%s5512_s8 + $0x28] sm:$0xff]  ;;  %v3146_v53 = vld [vmem:[%s5512_s8 + $0xd8] sm:$0xff]  ;;  %v2780_v45 = vld [vmem:[%s5564_s15 + $0x20] sm:$0xff] }
 0x3ff   : > { %3774 = vmatprep.subr.bf16.mxu0 %v4352_v14  ;;  %3391 = vmatprep.mubr.msk.f32.mxu0 %vm4353_vm9, %v4350_v0  ;;  %v3802_v37 = vpack.c.bf16 %v2179_v34, %v2178_v23  ;;  %v3835_v55 = vpack.c.bf16 %v3146_v53, %v3145_v52  ;;  %v2363_v23 = vld [vmem:[#allocation7 + $0x70] sm:$0xff]  ;;  %v2364_v34 = vld [vmem:[#allocation7 + $0x78] sm:$0xff]  ;;  %v2600_v52 = vld [vmem:[#allocation7 + $0xe0] sm:$0xff] }
 0x400   : > { %3415 = vmatprep.subr.mxu1 %v4350_v0  ;;  %3417 = vmatprep.mubr.msk.f32.mxu1 %vm4353_vm9, %v4350_v0  ;;  %v2601_v53 = vld [vmem:[#allocation7 + $0xe8] sm:$0xff]  ;;  %v2781_v46 = vld [vmem:[%s5564_s15 + $0x28] sm:$0xff] }
 0x402   : > { %3776 = vmatpush3.bf16.msra.mxu0 %v3775_v56  ;;  %v2186_v56 = vld [vmem:[%s5512_s8 + $0x60] sm:$0xff] }
 0x403   : > { %3777 = vmatprep.subr.bf16.mxu0 %v4352_v14  ;;  %v3814_v60 = vpack.c.bf16 %v2187_v57, %v2186_v56  ;;  %v2518_v56 = vld [vmem:[#allocation7 + $0xa8] sm:$0xff]  ;;  %v3886_v57 = vpack.c.bf16 %v2601_v53, %v2600_v52 }
 0x406   : > { %3779 = vmatpush3.bf16.msra.mxu0 %v3778_v59  ;;  %v3148_v59 = vld [vmem:[%s5512_s8 + $0xe8] sm:$0xff] }
 0x407   : > { %3780 = vmatprep.subr.bf16.mxu0 %v4352_v14  ;;  %v3838_v61 = vpack.c.bf16 %v3148_v59, %v3147_v58  ;;  %v2602_v58 = vld [vmem:[#allocation7 + $0xf0] sm:$0xff]  ;;  %v2603_v59 = vld [vmem:[#allocation7 + $0xf8] sm:$0xff] }
 0x40a   : > { %3782 = vmatpush3.bf16.msra.mxu0 %v3781_v62  ;;  %v2188_v62 = vld [vmem:[%s5512_s8 + $0x70] sm:$0xff] }
 0x40b   : > { %3389 = vmatprep.subr.mxu0 %v4350_v0 }
 0x40e   : > { %3390 = vmatpush3.msra.mxu0 %v3120_v63  ;;  %v2189_v63 = vld [vmem:[%s5512_s8 + $0x78] sm:$0xff] }
 0x40f   : > { %3392 = vmatmul.mubr.msk.f32.vlgmr.msra.gmra.mrb[10].mxu0 %vm1612_vm10, %v5133_v35  ;;  %3420 = vmatprep.subr.mxu0 %v4350_v0  ;;  %v3139_v35 = vld [vmem:[%s5512_s8 + $0xa0] sm:$0xff] }
 0x410   : > { %3422 = vmatprep.mubr.msk.f32.mxu0 %vm4353_vm9, %v4350_v0  ;;  %v3826_v38 = vpack.c.bf16 %v3140_v36, %v3139_v35  ;;  %v3853_v35 = vpack.c.bf16 %v2364_v34, %v2363_v23  ;;  %v2596_v36 = vld [vmem:[#allocation7 + $0xc0] sm:$0xff] }
 0x4be   : > { %v1681_v2 = vpop.f32.mrb[6].mxu0  ;;  %v1838_v3 = vpop.f32.mrb[16].mxu1 }
 0x4bf   : > { %v3330_v4 = vpop.f32.mrb[7].mxu0  ;;  %v3372_v5 = vpop.f32.mrb[17].mxu1 }
 0x4c0   : > { %v3150_v4 = vld [vmem:[%s5512_s8 + $0xf8] sm:$0xff] }
 0x4d0   : > { %v1753_v6 = vpop.f32.mrb[8].mxu0 }
 0x4d1   : > { %v1754_v7 = vadd.f32 %v1753_v6, %v1681_v2  ;;  %v2010_v8 = vpop.f32.mrb[18].mxu1  ;;  %v3351_v9 = vpop.f32.mrb[9].mxu0  ;;  %v3149_v2 = vld [vmem:[%s5512_s8 + $0xf0] sm:$0xff] }
 0x4d2   : > { %v3414_v10 = vpop.f32.mrb[19].mxu1  ;;  %v3841_v5 = vpack.c.bf16 %v3150_v4, %v3149_v2  ;;  %v2348_v6 = vld [vmem:[#allocation7] sm:$0xff]  ;;  %v2358_v9 = vld [vmem:[#allocation7 + $0x48] sm:$0xff] }
 0x4d3   : > { %v1842_v11 = vadd.f32 %v1838_v3, %v1754_v7  ;;  %v3817_v3 = vpack.c.bf16 %v2189_v63, %v2188_v62  ;;  %v2349_v7 = vld [vmem:[#allocation7 + $0x8] sm:$0xff]  ;;  %v2520_v62 = vld [vmem:[#allocation7 + $0xb8] sm:$0xff]  ;;  %v3889_v63 = vpack.c.bf16 %v2603_v59, %v2602_v58 }
 0x4d4   : > { %v2681_v4 = vld [vmem:[%s5562_s30 + $0x8] sm:$0xff] }
 0x4e2   : > { %v1924_v12 = vpop.f32.mrb[10].mxu0 }
 0x4e3   : > { %v1928_v15 = vadd.f32 %v1924_v12, %v1842_v11  ;;  %v3393_v16 = vpop.f32.mrb[11].mxu0  ;;  %v3856_v12 = vpack.c.bf16 %v2349_v7, %v2348_v6 }
 0x4e4   : > { %v2350_v16 = vld [vmem:[#allocation7 + $0x10] sm:$0xff] }
 0x4e5   : > { %v2014_v19 = vadd.f32 %v2010_v8, %v1928_v15  ;;  %v2357_v8 = vld [vmem:[#allocation7 + $0x40] sm:$0xff] }
 0x4e6   : > { %v3844_v15 = vpack.c.bf16 %v2358_v9, %v2357_v8  ;;  %v2682_v8 = vld [vmem:[%s5562_s30 + $0x10] sm:$0xff]  ;;  %v2683_v9 = vld [vmem:[%s5562_s30 + $0x18] sm:$0xff] }
 0x4e7   : > { %v2022_v24 = vadd.f32 %v3132_v17, %v2014_v19 }
 0x4e9   : > { %3416 = vmatpush3.msra.mxu1 %v2022_v24  ;;  %3421 = vmatpush3.msra.mxu0 %v2022_v24  ;;  %v3859_v24 = vpack.c.bf16 %v2351_v20, %v2350_v16  ;;  %v2686_v16 = vld [vmem:[%s5562_s30 + $0x30] sm:$0xff]  ;;  %v2689_v20 = vld [vmem:[%s5562_s30 + $0x48] sm:$0xff] }
 0x4ea   : > { %3418 = vmatmul.mubr.msk.f32.vlgmr.msra.gmra.mrb[20].mxu1 %vm2024_vm11, %v2023_v25  ;;  %3423 = vmatmul.mubr.msk.f32.vlgmr.msra.gmra.mrb[12].mxu0 %vm2024_vm11, %v2099_v26  ;;  %v3847_v25 = vpack.c.bf16 %v2360_v22, %v2359_v21  ;;  %v2352_v26 = vld [vmem:[#allocation7 + $0x20] sm:$0xff] }
 0x4eb   : > { %3795 = vmatprep.subr.bf16.mxu0 %v4352_v14  ;;  %3819 = vmatprep.subr.bf16.mxu1 %v4352_v14  ;;  %v2690_v22 = vld [vmem:[%s5562_s30 + $0x50] sm:$0xff] }
 0x4ec   : > { %3797 = vmatpush3.bf16.msra.mxu0 %v3796_v27  ;;  %3821 = vmatpush3.bf16.msra.mxu1 %v3820_v28  ;;  %v2353_v27 = vld [vmem:[#allocation7 + $0x28] sm:$0xff]  ;;  %v2361_v28 = vld [vmem:[#allocation7 + $0x60] sm:$0xff] }
 0x4ed   : > { %3798 = vmatprep.subr.bf16.mxu0 %v4352_v14  ;;  %3822 = vmatprep.subr.bf16.mxu1 %v4352_v14  ;;  %v3862_v31 = vpack.c.bf16 %v2353_v27, %v2352_v26  ;;  %v3850_v32 = vpack.c.bf16 %v2362_v30, %v2361_v28  ;;  %v2692_v26 = vld [vmem:[%s5562_s30 + $0x60] sm:$0xff]  ;;  %v2693_v27 = vld [vmem:[%s5562_s30 + $0x68] sm:$0xff]  ;;  %v2694_v30 = vld [vmem:[%s5562_s30 + $0x70] sm:$0xff] }
 0x4ee   : > { %3457 = vmatprep.mubr.msk.f32.mxu0 %vm4353_vm9, %v4350_v0  ;;  %3492 = vmatprep.mubr.msk.f32.mxu1 %vm4353_vm9, %v4350_v0  ;;  %v3910_v28 = vpack.c.bf16 %v2693_v27, %v2692_v26 }
 0x4f0   : > { %3800 = vmatpush3.bf16.msra.mxu0 %v3799_v1  ;;  %3824 = vmatpush3.bf16.msra.mxu1 %v3823_v13  ;;  %v2355_v1 = vld [vmem:[#allocation7 + $0x38] sm:$0xff] }
 0x4f1   : > { %3801 = vmatprep.subr.bf16.mxu0 %v4352_v14  ;;  %3825 = vmatprep.subr.bf16.mxu1 %v4352_v14  ;;  %v3865_v13 = vpack.c.bf16 %v2355_v1, %v2354_v33 }
 0x4f4   : > { %3803 = vmatpush3.bf16.msra.mxu0 %v3802_v37  ;;  %3827 = vmatpush3.bf16.msra.mxu1 %v3826_v38  ;;  %v2597_v37 = vld [vmem:[#allocation7 + $0xc8] sm:$0xff]  ;;  %v2513_v38 = vld [vmem:[#allocation7 + $0x80] sm:$0xff] }
 0x4f5   : > { %3804 = vmatprep.subr.bf16.mxu0 %v4352_v14  ;;  %3828 = vmatprep.subr.bf16.mxu1 %v4352_v14  ;;  %v3880_v41 = vpack.c.bf16 %v2597_v37, %v2596_v36  ;;  %v3868_v47 = vpack.c.bf16 %v2514_v39, %v2513_v38  ;;  %v2678_v38 = vld [vmem:[#allocation8] sm:$0x1] }
 0x4f8   : > { %3806 = vmatpush3.bf16.msra.mxu0 %v3805_v42  ;;  %3830 = vmatpush3.bf16.msra.mxu1 %v3829_v43 }
 0x4f9   : > { %3807 = vmatprep.subr.bf16.mxu0 %v4352_v14  ;;  %3831 = vmatprep.subr.bf16.mxu1 %v4352_v14 }
 0x4fc   : > { %3809 = vmatpush3.bf16.msra.mxu0 %v3808_v48  ;;  %3833 = vmatpush3.bf16.msra.mxu1 %v3832_v49  ;;  %v2515_v49 = vld [vmem:[#allocation7 + $0x90] sm:$0xff] }
 0x4fd   : > { %3810 = vmatprep.subr.bf16.mxu0 %v4352_v14  ;;  %3834 = vmatprep.subr.bf16.mxu1 %v4352_v14 }
 0x500   : > { %3812 = vmatpush3.bf16.msra.mxu0 %v3811_v54  ;;  %3836 = vmatpush3.bf16.msra.mxu1 %v3835_v55  ;;  %v3871_v54 = vpack.c.bf16 %v2516_v50, %v2515_v49  ;;  %v2517_v55 = vld [vmem:[#allocation7 + $0xa0] sm:$0xff]  ;;  %v2783_v49 = vld [vmem:[%s5564_s15 + $0x38] sm:$0xff] }
 0x501   : > { %3813 = vmatprep.subr.bf16.mxu0 %v4352_v14  ;;  %3837 = vmatprep.subr.bf16.mxu1 %v4352_v14 }
 0x504   : > { %3815 = vmatpush3.bf16.msra.mxu0 %v3814_v60  ;;  %3839 = vmatpush3.bf16.msra.mxu1 %v3838_v61  ;;  %v3874_v60 = vpack.c.bf16 %v2518_v56, %v2517_v55  ;;  %v2519_v61 = vld [vmem:[#allocation7 + $0xb0] sm:$0xff] }
 0x505   : > { %3816 = vmatprep.subr.bf16.mxu0 %v4352_v14  ;;  %3840 = vmatprep.subr.bf16.mxu1 %v4352_v14  ;;  %v3877_v2 = vpack.c.bf16 %v2520_v62, %v2519_v61 }
 0x508   : > { %3818 = vmatpush3.bf16.msra.mxu0 %v3817_v3  ;;  %3842 = vmatpush3.bf16.msra.mxu1 %v3841_v5  ;;  %v2680_v3 = vld [vmem:[%s5562_s30] sm:$0xff] }
 0x509   : > { %3843 = vmatprep.subr.bf16.mxu0 %v4352_v14  ;;  %3855 = vmatprep.subr.bf16.mxu1 %v4352_v14  ;;  %v3892_v6 = vpack.c.bf16 %v2681_v4, %v2680_v3 }
 0x5bd   : > { %v2094_v10 = vpop.f32.mrb[20].mxu1  ;;  %v2169_v11 = vpop.f32.mrb[12].mxu0 }
 0x5be   : > { %v2173_v17 = vmax.f32 %v2094_v10, %v2169_v11  ;;  %v3419_v18 = vpop.f32.mrb[21].mxu1  ;;  %v3424_v19 = vpop.f32.mrb[13].mxu0  ;;  %v3895_v10 = vpack.c.bf16 %v2683_v9, %v2682_v8  ;;  %v2684_v11 = vld [vmem:[%s5562_s30 + $0x20] sm:$0xff] }
 0x5bf   : > { %v2688_v19 = vld [vmem:[%s5562_s30 + $0x40] sm:$0xff] }
 0x5c0   : > { %3458 = vmatmul.mubr.f32.vlgmr.msra.gmra.mrb[14].mxu0 %v2173_v17  ;;  %3493 = vmatmul.mubr.f32.vlgmr.msra.gmra.mrb[22].mxu1 %v2173_v17  ;;  %v2687_v17 = vld [vmem:[%s5562_s30 + $0x38] sm:$0xff]  ;;  %v3904_v21 = vpack.c.bf16 %v2689_v20, %v2688_v19 }
 0x5c1   : > { %3857 = vmatpush3.bf16.msra.mxu1 %v3856_v12  ;;  %3845 = vmatpush3.bf16.msra.mxu0 %v3844_v15  ;;  %v2685_v12 = vld [vmem:[%s5562_s30 + $0x28] sm:$0xff]  ;;  %v3901_v18 = vpack.c.bf16 %v2687_v17, %v2686_v16 }
 0x5c2   : > { %3858 = vmatprep.subr.bf16.mxu1 %v4352_v14  ;;  %3846 = vmatprep.subr.bf16.mxu0 %v4352_v14  ;;  %v3898_v15 = vpack.c.bf16 %v2685_v12, %v2684_v11 }
 0x5c3   : > { %3530 = vmatprep.mubr.msk.f32.mxu1 %vm4353_vm9, %v4350_v0  ;;  %3511 = vmatprep.mubr.msk.f32.mxu0 %vm4353_vm9, %v4350_v0 }
 0x5c5   : > { %3860 = vmatpush3.bf16.msra.mxu1 %v3859_v24  ;;  %3848 = vmatpush3.bf16.msra.mxu0 %v3847_v25  ;;  %v2691_v24 = vld [vmem:[%s5562_s30 + $0x58] sm:$0xff] }
 0x5c6   : > { %3861 = vmatprep.subr.bf16.mxu1 %v4352_v14  ;;  %3849 = vmatprep.subr.bf16.mxu0 %v4352_v14  ;;  %v3907_v25 = vpack.c.bf16 %v2691_v24, %v2690_v22 }
 0x5c9   : > { %3863 = vmatpush3.bf16.msra.mxu1 %v3862_v31  ;;  %3851 = vmatpush3.bf16.msra.mxu0 %v3850_v32 }
 0x5ca   : > { %3864 = vmatprep.subr.bf16.mxu1 %v4352_v14  ;;  %3852 = vmatprep.subr.bf16.mxu0 %v4352_v14 }
 0x5cd   : > { %3866 = vmatpush3.bf16.msra.mxu1 %v3865_v13  ;;  %3854 = vmatpush3.bf16.msra.mxu0 %v3853_v35 }
 0x5ce   : > { %3879 = vmatprep.subr.bf16.mxu1 %v4352_v14  ;;  %3867 = vmatprep.subr.bf16.mxu0 %v4352_v14 }
 0x693   : > { %v2256_v40 = vpop.f32.mrb[14].mxu0  ;;  %v2343_v29 = vpop.f32.mrb[22].mxu1 }
 0x694   : > { %v2347_v42 = vmax.f32 %v2256_v40, %v2343_v29  ;;  %v3459_v43 = vpop.f32.mrb[15].mxu0  ;;  %v3494_v44 = vpop.f32.mrb[23].mxu1  ;;  %v2777_v29 = vld [vmem:[%s5564_s15 + $0x8] sm:$0xff] }
 0x695   : > { %v2779_v43 = vld [vmem:[%s5564_s15 + $0x18] sm:$0xff] }
 0x696   : > { %v2366_v48 = vrot.slane %v2347_v42, 1  ;;  %3531 = vmatmul.mubr.msk.f32.vlgmr.msra.gmra.mrb[24].mxu1 %vm2367_vm12, %v2347_v42  ;;  %v2604_v5 = vrot.slane %v2347_v42, 3  ;;  %v2521_v7 = vrot.slane %v2347_v42, 2  ;;  %v2778_v42 = vld [vmem:[%s5564_s15 + $0x10] sm:$0xff] }
 0x697   : > { %3881 = vmatpush3.bf16.msra.mxu1 %v3880_v41  ;;  %3568 = vmatprep.mubr.msk.f32.mxu1 %vm4353_vm9, %v4350_v0  ;;  %v3916_v44 = vpack.c.bf16 %v2779_v43, %v2778_v42 }
 0x698   : > { %3512 = vmatmul.mubr.msk.f32.vlgmr.msra.gmra.mrb[16].mxu0 %vm2367_vm12, %v2366_v48  ;;  %3882 = vmatprep.subr.bf16.mxu1 %v4352_v14  ;;  %v2782_v48 = vld [vmem:[%s5564_s15 + $0x30] sm:$0xff] }
 0x699   : > { %3869 = vmatpush3.bf16.msra.mxu0 %v3868_v47  ;;  %3549 = vmatprep.mubr.msk.f32.mxu0 %vm4353_vm9, %v4350_v0  ;;  %v3919_v47 = vpack.c.bf16 %v2781_v46, %v2780_v45  ;;  %v3922_v50 = vpack.c.bf16 %v2783_v49, %v2782_v48 }
 0x69a   : > { %3870 = vmatprep.subr.bf16.mxu0 %v4352_v14 }
 0x69b   : > { %3884 = vmatpush3.bf16.msra.mxu1 %v3883_v51  ;;  %v2695_v51 = vld [vmem:[#allocation10] sm:$0x1] }
 0x69c   : > { %3885 = vmatprep.subr.bf16.mxu1 %v4352_v14 }
 0x69d   : > { %3872 = vmatpush3.bf16.msra.mxu0 %v3871_v54 }
 0x69e   : > { %3873 = vmatprep.subr.bf16.mxu0 %v4352_v14 }
 0x69f   : > { %3887 = vmatpush3.bf16.msra.mxu1 %v3886_v57 }
 0x6a0   : > { %3888 = vmatprep.subr.bf16.mxu1 %v4352_v14 }
 0x6a1   : > { %3875 = vmatpush3.bf16.msra.mxu0 %v3874_v60  ;;  %v2784_v60 = vld [vmem:[#allocation11] sm:$0x1] }
 0x6a2   : > { %3876 = vmatprep.subr.bf16.mxu0 %v4352_v14 }
 0x6a3   : > { %3890 = vmatpush3.bf16.msra.mxu1 %v3889_v63 }
 0x6a4   : > { %3912 = vmatprep.subr.bf16.mxu1 %v4352_v14 }
 0x6a5   : > { %3878 = vmatpush3.bf16.msra.mxu0 %v3877_v2 }
 0x6a6   : > { %3569 = vmatmul.mubr.msk.f32.vlgmr.msra.gmra.mrb[26].mxu1 %vm2367_vm12, %v2604_v5  ;;  %3891 = vmatprep.subr.bf16.mxu0 %v4352_v14 }
 0x6a7   : > { %3620 = vmatprep.mubr.msk.f32.mxu1 %vm4353_vm9, %v4350_v0 }
 0x6a8   : > { %3550 = vmatmul.mubr.msk.f32.vlgmr.msra.gmra.mrb[18].mxu0 %vm2367_vm12, %v2521_v7 }
 0x6a9   : > { %3893 = vmatpush3.bf16.msra.mxu0 %v3892_v6  ;;  %3601 = vmatprep.mubr.msk.f32.mxu0 %vm4353_vm9, %v4350_v0 }
 0x6aa   : > { %3894 = vmatprep.subr.bf16.mxu0 %v4352_v14 }
 0x6ad   : > { %3896 = vmatpush3.bf16.msra.mxu0 %v3895_v10 }
 0x6ae   : > { %3897 = vmatprep.subr.bf16.mxu0 %v4352_v14 }
 0x6b1   : > { %3899 = vmatpush3.bf16.msra.mxu0 %v3898_v15 }
 0x6b2   : > { %3900 = vmatprep.subr.bf16.mxu0 %v4352_v14 }
 0x6b5   : > { %3902 = vmatpush3.bf16.msra.mxu0 %v3901_v18 }
 0x6b6   : > { %3903 = vmatprep.subr.bf16.mxu0 %v4352_v14 }
 0x6b9   : > { %3905 = vmatpush3.bf16.msra.mxu0 %v3904_v21 }
 0x6ba   : > { %3906 = vmatprep.subr.bf16.mxu0 %v4352_v14 }
 0x6bd   : > { %3908 = vmatpush3.bf16.msra.mxu0 %v3907_v25 }
 0x6be   : > { %3909 = vmatprep.subr.bf16.mxu0 %v4352_v14 }
 0x6c1   : > { %3911 = vmatpush3.bf16.msra.mxu0 %v3910_v28 }
 0x6c2   : > { %3599 = vmatprep.subr.mxu0 %v4350_v0  ;;  %v2776_v0 = vld [vmem:[%s5563_s18] sm:$0xff]  ;;  %s5565_s18 = sld [smem:[#allocation20_spill]] }
 0x6c3   : > { %v3913_v41 = vpack.c.bf16 %v2777_v29, %v2776_v0 }
 0x6c5   : > { %3600 = vmatpush3.msra.mxu0 %v2694_v30  ;;  %3914 = vmatpush3.bf16.msra.mxu1 %v3913_v41 }
 0x6c6   : > { %3915 = vmatprep.subr.bf16.mxu1 %v4352_v14 }
 0x6c8   : > { %s565_s21 = sand.u32 1, %s5565_s18  }
 0x6c9   : > { %3917 = vmatpush3.bf16.msra.mxu1 %v3916_v44  ;;  %s566_s28 = scalar_lea.vmem [#allocation13], %s565_s21  ;;  %s2861_s20 = scalar_lea.sflag [#allocation4], %s565_s21 }
 0x6ca   : > { %3918 = vmatprep.subr.bf16.mxu1 %v4352_v14  ;;  %s2873_s24 = sshll.u32 %s566_s28, 4  ;;  %s5464_s24 = int_to_ptr.vmem [resolvable:$true] %s2873_s24 }
 0x6cb   : > { %s4260_s26 = scalar_lea.vmem %s5464_s24, 16  ;;  %p4267_p2 = scmp.lt.s32.totalorder %s5464_s24, %s4265_s19 }
 0x6cc   : > { %p4261_p13 = scmp.ne.s32.totalorder %s5464_s24, %s4260_s26  ;;  %p4268_p0 = scmp.lt.s32.totalorder %s4266_s11, %s4260_s26 }
 0x6cd   : > { %3920 = vmatpush3.bf16.msra.mxu1 %v3919_v47 }
 0x6ce   : > { %3921 = vmatprep.subr.bf16.mxu1 %v4352_v14  ;;  %p4262_p6 = pnand %p4261_p13, %p5568_p1  ;;  %p4269_p5 = por %p4268_p0, %p4267_p2 }
 0x6d0   : > { %p4263_p9 = pneg %p4262_p6 }
 0x6d1   : > { %3923 = vmatpush3.bf16.msra.mxu1 %v3922_v50 }
 0x6d2   : > { %p4270_p10 = pnand %p4269_p5, %p4263_p9 }
 0x769   : > { %v2508_v31 = vpop.f32.mrb[24].mxu1 }
 0x76a   : > { %v3532_v32 = vpop.f32.mrb[25].mxu1 }
 0x76b   : > { %v2436_v33 = vpop.f32.mrb[16].mxu0 }
 0x76c   : > { %v2509_v1 = vadd.f32 %v2508_v31, %v2436_v33  ;;  %v3513_v13 = vpop.f32.mrb[17].mxu0 }
 0x779   : > { %v2673_v23 = vpop.f32.mrb[26].mxu1 }
 0x77a   : > { %v3570_v34 = vpop.f32.mrb[27].mxu1 }
 0x77b   : > { %v2590_v35 = vpop.f32.mrb[18].mxu0 }
 0x77c   : > { %v2594_v36 = vadd.f32 %v2590_v35, %v2509_v1  ;;  %v3551_v37 = vpop.f32.mrb[19].mxu0 }
 0x77e   : > { %v2677_v39 = vadd.f32 %v2673_v23, %v2594_v36 }
 0x780   : > { %v2679_v40 = vadd.f32 %v2678_v38, %v2677_v39 }
 0x782   : > { %3602 = vmatmul.mubr.msk.f32.vlgmr.msra.gmra.mrb[20].mxu0 %vm2696_vm13, %v2679_v40 }
 0x855   : > { %v2766_v52 = vpop.f32.mrb[20].mxu0 }
 0x856   : > { %v2767_v53 = vadd.f32 %v2766_v52, %v2695_v51  ;;  %v3603_v54 = vpop.f32.mrb[21].mxu0 }
 0x858   : > { %v2770_v55 = vsub.f32 0.0, %v2767_v53 }
 0x85a   : > { %v2771_v56 = vmul.f32 1.442695, %v2770_v55 }
 0x85c   : > { %4088 = vpow2.f32 %v2771_v56 }
 0x866   : > { %v4089_v57 = vpop.eup %4088 }
 0x867   : > { %v2773_v58 = vadd.f32 1.0, %v4089_v57 }
 0x869   : > { %4090 = vrcp.f32 %v2773_v58 }
 0x873   : > { %v4091_v59 = vpop.eup %4090 }
 0x874   : > { %3621 = vmatmul.mubr.msk.f32.vlgmr.msra.gmra.mrb[28].mxu1 %vm2367_vm12, %v4091_v59 }
 0x947   : > { %v2854_v14 = vpop.f32.mrb[28].mxu1 }
 0x948   : > { %v2855_v61 = vadd.f32 %v2854_v14, %v2784_v60  ;;  %v3622_v62 = vpop.f32.mrb[29].mxu1 }
 0x94a   : > { %2859 = vst.msk [vmem:[%s566_s28] sm:$0x1] %vm2858_vm14, %v2855_v61 }
 0x94b   : > { %4273 = shalt.err (!%p4270_p10)
}
 0x94c   : > { %s4274_s27 = scalar_lea.hbm %s5462_s25, 16  ;;  %s4278_s13 = scalar_lea.hbm %s5567_s16, 32 }
 0x94d   : > { %p4275_p3 = scmp.ne.s32.totalorder %s5462_s25, %s4274_s27  ;;  %p4279_p7 = scmp.lt.u32.totalorder %s5462_s25, %s5567_s16 }
 0x94e   : > { %p4280_p8 = scmp.lt.u32.totalorder %s4278_s13, %s4274_s27  ;;  %p4282_p13 = scmp.lt.u32.totalorder %s4274_s27, %s5462_s25 }
 0x94f   : > { %p4276_p4 = pnand %p4275_p3, %p5568_p1 }
 0x950   : > { %p4281_p11 = por %p4280_p8, %p4279_p7 }
 0x951   : > { %p4277_p12 = pneg %p4276_p4 }
 0x952   : > { %p4283_p6 = por %p4282_p13, %p4281_p11 }
 0x954   : > { %p4284_p9 = pnand %p4283_p6, %p4277_p12 }
 0x956   : > { %4287 = shalt.err (!%p4284_p9)
}
 0x957   : > { %3972 = dma.vmem_to_hbm [thread:$0]  (%p5568_p1), %s5464_s24, 16, %s5462_s25, %s2861_s20  }
 0x958 PF: > { %s5569_s17 = sld [smem:[#allocation22_spill]]  ;;  %s5570_s26 = sld [smem:[#allocation19_spill]] }
 0x959   : > { %s5571_s22 = sld [smem:[#allocation26_spill]] }
 0x95e   : > { %p4009_p2 = scmp.ge.s32.totalorder %s5569_s17, 2  ;;  %s2885_s19 = sand.u32 1, %s5570_s26  }
 0x95f   : > { %p5572_p0 = scmp.ne.s32.totalorder %s5571_s22, 0  ;;  %s2886_s11 = scalar_lea.sflag [#allocation4], %s2885_s19 }
 0x961   : > { %p3994_p5 = pnand %p4009_p2, %p5572_p0 }
 0x963   : > { %4321 = dma.done.wait (!%p3994_p5), %s2886_s11, 16  }
 0x964   : > { %4323 = vsyncadd (!%p3994_p5), %s2886_s11, 4294967280  ;;  %s5573_s21 = sld [smem:[#allocation23_spill]]  ;;  %s5574_s18 = sld [smem:[#allocation20_spill]] }
 0x965   : > { %s5575_s19 = sld [smem:[#allocation21_spill]]  ;;  %s5576_s20 = sld [smem:[#allocation24_spill]] }
 0x96a   : > { %p29_p10 = scmp.ge.s32.totalorder %s5573_s21, 4  }
 0x96c   :  { %31 = sbr.rel (!%p29_p10) target bundleno = 11 (0xb), region = 155 }
 0x973   :  { %2890 = vsyncpa [#allocation3], 1 }
 0x974   :  { %2892 = vsyncpa [#allocation3 + $0x1], 1 }
 0x975   :  { %2893 = vsyncpa [#allocation6], 1 }
 0x976   :  { %2894 = vsyncpa [#allocation9], 1 }
 0x977   :  { %2895 = vsyncpa [#allocation12], 1 }
 0x978   :  { %2896 = vsyncpa [#allocation4], 1 }
 0x979   :  { %2898 = vsyncpa [#allocation4 + $0x1], 1 }

</bundles_post_ra>
